<compile_context>
chip_gen: v5e
topology: v5e:2x2
jax: 0.10.0
libtpu: 0.0.40
codegen_flags: <defaults>
</compile_context>

<pallas_src>
import functools
import math

import jax
import jax.numpy as jnp
from jax.experimental import pallas as pl


# ---------------------------------------------------------------------------
# Pallas kernel: full SelfAttention forward for the whole batch in one step.
# ---------------------------------------------------------------------------
def _self_attn_kernel(x_ref, wqkv_ref, bqkv_ref, wo_ref, cp_ref, o_ref, *,
                      n_head, sub_d):
    # x_ref:    (B, C, T)  module-native layout (no wrapper transpose)
    # wqkv_ref: (C, 3*D)   [Wq^T * 1/sqrt(d_head) | Wk^T | Wv^T], bf16
    # bqkv_ref: (1, 3*D)   [bq * 1/sqrt(d_head) | bk | bv], f32
    # wo_ref:   (D, C)     Wo^T, bf16
    # cp_ref:   (3, C)     rows = LayerNorm gamma, LayerNorm beta, out bias
    # o_ref:    (B, C, T)  resi + out_linear(context), module-native layout
    n_batch, _, seq_len = x_ref.shape
    d_feat = n_head * sub_d

    gamma = cp_ref[0:1, :]                                # (1, C)
    beta = cp_ref[1:2, :]
    b_out = cp_ref[2:3, :]

    # ---- (B, C, T) -> (B*T, C) slab: per-batch XLU transpose + sublane concat
    x_slab = jnp.concatenate(
        [jnp.transpose(x_ref[b], (1, 0)) for b in range(n_batch)], axis=0)

    # ---- LayerNorm over channels (two-pass variance, eps=1e-5), f32 VPU math.
    mean = jnp.mean(x_slab, axis=-1, keepdims=True)       # (B*T, 1)
    xc = x_slab - mean
    var = jnp.mean(xc * xc, axis=-1, keepdims=True)
    xn = xc * jax.lax.rsqrt(var + 1e-5) * gamma + beta    # (B*T, C)

    # ---- Fused Q|K|V projection: one wide (B*T, C) @ (C, 3D) bf16 MXU matmul.
    qkv = jnp.dot(xn.astype(jnp.bfloat16), wqkv_ref[...],
                  preferred_element_type=jnp.float32) + bqkv_ref[...]

    # ---- Shared causal mask (strictly-upper scores get -1e9, like PyTorch).
    row = jax.lax.broadcasted_iota(jnp.int32, (seq_len, seq_len), 0)
    col = jax.lax.broadcasted_iota(jnp.int32, (seq_len, seq_len), 1)
    keep = col <= row

    wo = wo_ref[...]                                       # (D, C) bf16

    # ---- Per-(batch, head) attention, statically unrolled.  sub_d=16 lane
    #      slices of qkv are unavoidable at this head width; everything else
    #      (row slices, wo slices) is tile-aligned along sublanes.
    for b in range(n_batch):
        r0 = b * seq_len
        out_b = b_out                                      # (1, C), broadcasts
        for h in range(n_head):
            lo = h * sub_d
            q_h = qkv[r0:r0 + seq_len, lo:lo + sub_d]                  # (T, S)
            k_h = qkv[r0:r0 + seq_len, d_feat + lo:d_feat + lo + sub_d]
            v_h = qkv[r0:r0 + seq_len, 2 * d_feat + lo:2 * d_feat + lo + sub_d]

            # scores = (q/sqrt(d_head)) @ k^T  (scale pre-folded into Wq, bq)
            s = jax.lax.dot_general(
                q_h.astype(jnp.bfloat16), k_h.astype(jnp.bfloat16),
                (((1,), (1,)), ((), ())),
                preferred_element_type=jnp.float32)                    # (T, T)
            s = jnp.where(keep, s, s - 1e9)                # + (-1e9) * mask

            # softmax(dim=-1) with deferred normalization.
            m = jnp.max(s, axis=-1, keepdims=True)
            e = jnp.exp(s - m)
            denom = jnp.sum(e, axis=-1, keepdims=True)                 # (T, 1)
            ctx_h = jnp.dot(e.astype(jnp.bfloat16), v_h.astype(jnp.bfloat16),
                            preferred_element_type=jnp.float32)        # (T, S)
            ctx_h = ctx_h * pl.reciprocal(denom, approx=True)

            # Fold the output projection per head through a sublane-aligned
            # slice of Wo (no lane-dim concatenate of head contexts).
            out_b = out_b + jnp.dot(ctx_h.astype(jnp.bfloat16),
                                    wo[lo:lo + sub_d, :],
                                    preferred_element_type=jnp.float32)

        # Residual in the module's native (C, T) layout: resi + context^T.
        o_ref[b] = (x_ref[b] + jnp.transpose(out_b, (1, 0))).astype(o_ref.dtype)


# ---------------------------------------------------------------------------
# Wrapper: single grid-less pallas_call, no layout HLOs around it.
# ---------------------------------------------------------------------------
@functools.partial(jax.jit, static_argnames=("n_head",))
def self_attention_forward(x_bct, kparams, *, n_head):
    """x_bct: (B, in_feat, T) -> (B, in_feat, T), matching the PyTorch module."""
    B, C, T = x_bct.shape
    D3 = kparams["wqkv"].shape[1]
    D = D3 // 3
    sub_d = D // n_head

    kernel = functools.partial(_self_attn_kernel, n_head=n_head, sub_d=sub_d)

    flops = (2 * B * T * C * D3                       # QKV projection
             + B * n_head * 4 * T * T * sub_d         # scores + context
             + 2 * B * T * D * C)                     # output projection
    transcendentals = B * n_head * T * T + B * T + B * n_head * T
    bytes_accessed = (2 * B * C * T * 4               # x in + y out (f32)
                      + (C * D3 + D * C) * 2          # bf16 weights
                      + D3 * 4 + 3 * C * 4)           # biases / LN params

    return pl.pallas_call(
        kernel,
        out_shape=jax.ShapeDtypeStruct((B, C, T), jnp.float32),
        cost_estimate=pl.CostEstimate(flops=flops,
                                      transcendentals=transcendentals,
                                      bytes_accessed=bytes_accessed),
    )(x_bct, kparams["wqkv"], kparams["bqkv"], kparams["wo"], kparams["cp"])


# ---------------------------------------------------------------------------
# Parameter construction (deterministic, synthetic).
# `raw`  : per-matrix f32 weights that mirror the PyTorch module exactly
#          (Linear weight (out,in) already transposed to matmul form (in,out)).
# `kern` : kernel-ready fused inputs — Q|K|V concatenated column-wise, the
#          1/sqrt(d_head) score scale folded into the Q columns/bias, weights
#          stored bf16 for the MXU, per-channel vectors packed into one array.
# ---------------------------------------------------------------------------
def init_self_attention_params(key, in_feat, d_feat, n_head):
    ks = jax.random.split(key, 8)
    s_in = 1.0 / math.sqrt(in_feat)
    s_d = 1.0 / math.sqrt(d_feat)
    wq = jax.random.normal(ks[0], (in_feat, d_feat), jnp.float32) * s_in
    wk = jax.random.normal(ks[1], (in_feat, d_feat), jnp.float32) * s_in
    wv = jax.random.normal(ks[2], (in_feat, d_feat), jnp.float32) * s_in
    wo = jax.random.normal(ks[3], (d_feat, in_feat), jnp.float32) * s_d
    bq = jax.random.normal(ks[4], (d_feat,), jnp.float32) * 0.1
    bk = jax.random.normal(ks[5], (d_feat,), jnp.float32) * 0.1
    bv = jax.random.normal(ks[6], (d_feat,), jnp.float32) * 0.1
    bo = jax.random.normal(ks[7], (in_feat,), jnp.float32) * 0.1
    gamma = jnp.ones((in_feat,), jnp.float32)              # LayerNorm defaults
    beta = jnp.zeros((in_feat,), jnp.float32)

    raw = {"wq": wq, "wk": wk, "wv": wv, "wo": wo,
           "bq": bq, "bk": bk, "bv": bv, "bo": bo,
           "gamma": gamma, "beta": beta}

    inv_scale = 1.0 / math.sqrt(d_feat // n_head)           # exact power of two
    kern = {
        "wqkv": jnp.concatenate([wq * inv_scale, wk, wv],
                                axis=1).astype(jnp.bfloat16),   # (C, 3D) bf16
        "bqkv": jnp.concatenate([bq * inv_scale, bk, bv])[None, :],  # (1, 3D)
        "wo": wo.astype(jnp.bfloat16),                           # (D, C) bf16
        "cp": jnp.stack([gamma, beta, bo], axis=0),              # (3, C)
    }
    return raw, kern


# ---------------------------------------------------------------------------
# Pure-JAX reference (mirrors the PyTorch module exactly, all f32).
# ---------------------------------------------------------------------------
def _self_attention_reference(x_bct, raw, n_head):
    hi = jax.lax.Precision.HIGHEST
    B, C, T = x_bct.shape
    D = raw["wq"].shape[1]
    sub_d = D // n_head
    scale = math.sqrt(D // n_head)

    x = jnp.transpose(x_bct, (0, 2, 1))                    # (B, T, C)
    mean = jnp.mean(x, axis=-1, keepdims=True)
    var = jnp.mean((x - mean) ** 2, axis=-1, keepdims=True)
    xn = (x - mean) / jnp.sqrt(var + 1e-5) * raw["gamma"] + raw["beta"]

    q = jnp.einsum("btc,cd->btd", xn, raw["wq"], precision=hi) + raw["bq"]
    k = jnp.einsum("btc,cd->btd", xn, raw["wk"], precision=hi) + raw["bk"]
    v = jnp.einsum("btc,cd->btd", xn, raw["wv"], precision=hi) + raw["bv"]

    def split(a):                                          # (B,T,D)->(B,H,T,S)
        return a.reshape(B, T, n_head, sub_d).transpose(0, 2, 1, 3)

    q, k, v = split(q), split(k), split(v)
    s = jnp.einsum("bhts,bhus->bhtu", q, k, precision=hi) / scale
    mask = jnp.triu(jnp.ones((T, T), jnp.float32), k=1)
    s = s + (-1e9) * mask
    p = jax.nn.softmax(s, axis=-1)
    ctx = jnp.einsum("bhtu,bhus->bhts", p, v, precision=hi)
    ctx = ctx.transpose(0, 2, 1, 3).reshape(B, T, D)
    out = jnp.einsum("btd,dc->btc", ctx, raw["wo"], precision=hi) + raw["bo"]
    return x_bct + jnp.transpose(out, (0, 2, 1))


if __name__ == "__main__":
    # Module config: SelfAttention(in_feat=64, d_feat=64, n_head=4, causal).
    in_feat, d_feat, n_head = 64, 64, 4
    B, T = 2, 32

    key = jax.random.PRNGKey(0)
    k_params, k_x = jax.random.split(key)
    raw_params, kern_params = init_self_attention_params(
        k_params, in_feat, d_feat, n_head)
    x = jax.random.normal(k_x, (B, in_feat, T), jnp.float32)

    out = self_attention_forward(x, kern_params, n_head=n_head)
    jax.block_until_ready(out)

    assert out.shape == (B, in_feat, T), out.shape
    assert bool(jnp.all(jnp.isfinite(out)))

    # Correctness vs a pure-f32 JAX reference.  The kernel uses bf16 MXU
    # operands (f32 accumulation), so rounding noise is ~1e-2 on O(1) outputs;
    # 5e-2 absorbs that while remaining orders of magnitude below any
    # structural bug (mask, head split, scale, residual -> O(1) errors).
    ref = _self_attention_reference(x, raw_params, n_head)
    err = float(jnp.max(jnp.abs(out - ref)))
    assert err < 5e-2, f"max abs err vs reference: {err}"
    print("KERNEL_OK")
</pallas_src>

<mosaic_0001>
module attributes {stable_mosaic.version = 11 : i64} {
  func.func @_self_attn_kernel(%arg0: memref<2x64x32xf32, #tpu.memory_space<vmem>>, %arg1: memref<64x192xbf16, #tpu.memory_space<vmem>>, %arg2: memref<1x192xf32, #tpu.memory_space<vmem>>, %arg3: memref<64x64xbf16, #tpu.memory_space<vmem>>, %arg4: memref<3x64xf32, #tpu.memory_space<vmem>>, %arg5: memref<2x64x32xf32, #tpu.memory_space<vmem>>) attributes {dimension_semantics = [], scalar_prefetch = 0 : i64, scratch_operands = 0 : i64, tpu.core_type = #tpu.core_type<tc>} {
    %c0 = arith.constant 0 : index
    %c0_0 = arith.constant 0 : index
    %0 = vector.load %arg4[%c0, %c0_0] : memref<3x64xf32, #tpu.memory_space<vmem>>, vector<1x64xf32>
    %c1 = arith.constant 1 : index
    %c0_1 = arith.constant 0 : index
    %1 = vector.load %arg4[%c1, %c0_1] : memref<3x64xf32, #tpu.memory_space<vmem>>, vector<1x64xf32>
    %c2 = arith.constant 2 : index
    %c0_2 = arith.constant 0 : index
    %2 = vector.load %arg4[%c2, %c0_2] : memref<3x64xf32, #tpu.memory_space<vmem>>, vector<1x64xf32>
    %c0_3 = arith.constant 0 : index
    %c0_4 = arith.constant 0 : index
    %c0_5 = arith.constant 0 : index
    %3 = vector.load %arg0[%c0_3, %c0_4, %c0_5] : memref<2x64x32xf32, #tpu.memory_space<vmem>>, vector<1x64x32xf32>
    %4 = vector.shape_cast %3 : vector<1x64x32xf32> to vector<64x32xf32>
    %5 = tpu.transpose %4, [1, 0] : vector<64x32xf32> -> vector<32x64xf32>
    %c1_6 = arith.constant 1 : index
    %c0_7 = arith.constant 0 : index
    %c0_8 = arith.constant 0 : index
    %6 = vector.load %arg0[%c1_6, %c0_7, %c0_8] : memref<2x64x32xf32, #tpu.memory_space<vmem>>, vector<1x64x32xf32>
    %7 = vector.shape_cast %6 : vector<1x64x32xf32> to vector<64x32xf32>
    %8 = tpu.transpose %7, [1, 0] : vector<64x32xf32> -> vector<32x64xf32>
    %9 = tpu.concatenate %5, %8 in 0 : vector<32x64xf32>, vector<32x64xf32> -> vector<64x64xf32>
    %cst = arith.constant dense<0.000000e+00> : vector<64xf32>
    %10 = vector.multi_reduction <add>, %9, %cst [1] : vector<64x64xf32> to vector<64xf32>
    %11 = vector.shape_cast %10 : vector<64xf32> to vector<64x1xf32>
    %cst_9 = arith.constant 6.400000e+01 : f32
    %12 = vector.broadcast %cst_9 : f32 to vector<64x1xf32>
    %13 = arith.divf %11, %12 : vector<64x1xf32>
    %14 = vector.broadcast %13 : vector<64x1xf32> to vector<64x64xf32>
    %15 = arith.subf %9, %14 : vector<64x64xf32>
    %16 = arith.mulf %15, %15 : vector<64x64xf32>
    %cst_10 = arith.constant dense<0.000000e+00> : vector<64xf32>
    %17 = vector.multi_reduction <add>, %16, %cst_10 [1] : vector<64x64xf32> to vector<64xf32>
    %18 = vector.shape_cast %17 : vector<64xf32> to vector<64x1xf32>
    %cst_11 = arith.constant 6.400000e+01 : f32
    %19 = vector.broadcast %cst_11 : f32 to vector<64x1xf32>
    %20 = arith.divf %18, %19 : vector<64x1xf32>
    %cst_12 = arith.constant 9.99999974E-6 : f32
    %21 = vector.broadcast %cst_12 : f32 to vector<64x1xf32>
    %22 = arith.addf %20, %21 : vector<64x1xf32>
    %23 = math.rsqrt %22 : vector<64x1xf32>
    %24 = vector.broadcast %23 : vector<64x1xf32> to vector<64x64xf32>
    %25 = arith.mulf %15, %24 : vector<64x64xf32>
    %26 = vector.broadcast %0 : vector<1x64xf32> to vector<64x64xf32>
    %27 = arith.mulf %25, %26 : vector<64x64xf32>
    %28 = vector.broadcast %1 : vector<1x64xf32> to vector<64x64xf32>
    %29 = arith.addf %27, %28 : vector<64x64xf32>
    %30 = arith.truncf %29 : vector<64x64xf32> to vector<64x64xbf16>
    %c0_13 = arith.constant 0 : index
    %c0_14 = arith.constant 0 : index
    %31 = vector.load %arg1[%c0_13, %c0_14] : memref<64x192xbf16, #tpu.memory_space<vmem>>, vector<64x192xbf16>
    %cst_15 = arith.constant dense<0.000000e+00> : vector<64x192xf32>
    %32 = tpu.matmul %30, %31, %cst_15 {dimension_numbers = #tpu.dot_dimension_numbers<[1], [0], [0], [1], [0, 0, 1, 1], [], []>} : vector<64x64xbf16>, vector<64x192xbf16>, vector<64x192xf32> -> vector<64x192xf32>
    %c0_16 = arith.constant 0 : index
    %c0_17 = arith.constant 0 : index
    %33 = vector.load %arg2[%c0_16, %c0_17] : memref<1x192xf32, #tpu.memory_space<vmem>>, vector<1x192xf32>
    %34 = vector.broadcast %33 : vector<1x192xf32> to vector<64x192xf32>
    %35 = arith.addf %32, %34 : vector<64x192xf32>
    %36 = tpu.iota {dimensions = array<i32: 0>} : vector<32x32xi32>
    %37 = tpu.iota {dimensions = array<i32: 1>} : vector<32x32xi32>
    %38 = arith.cmpi sle, %37, %36 : vector<32x32xi32>
    %c0_18 = arith.constant 0 : index
    %c0_19 = arith.constant 0 : index
    %39 = vector.load %arg3[%c0_18, %c0_19] : memref<64x64xbf16, #tpu.memory_space<vmem>>, vector<64x64xbf16>
    %40 = vector.extract_strided_slice %35 {offsets = [0, 0], sizes = [32, 16], strides = [1, 1]} : vector<64x192xf32> to vector<32x16xf32>
    %41 = vector.extract_strided_slice %35 {offsets = [0, 64], sizes = [32, 16], strides = [1, 1]} : vector<64x192xf32> to vector<32x16xf32>
    %42 = vector.extract_strided_slice %35 {offsets = [0, 128], sizes = [32, 16], strides = [1, 1]} : vector<64x192xf32> to vector<32x16xf32>
    %43 = arith.truncf %40 : vector<32x16xf32> to vector<32x16xbf16>
    %44 = arith.truncf %41 : vector<32x16xf32> to vector<32x16xbf16>
    %cst_20 = arith.constant dense<0.000000e+00> : vector<32x32xf32>
    %45 = tpu.matmul %43, %44, %cst_20 {dimension_numbers = #tpu.dot_dimension_numbers<[1], [1], [0], [0], [0, 0, 1, 0], [], []>} : vector<32x16xbf16>, vector<32x16xbf16>, vector<32x32xf32> -> vector<32x32xf32>
    %cst_21 = arith.constant 1.000000e+09 : f32
    %46 = vector.broadcast %cst_21 : f32 to vector<32x32xf32>
    %47 = arith.subf %45, %46 : vector<32x32xf32>
    %48 = arith.select %38, %45, %47 : vector<32x32xi1>, vector<32x32xf32>
    %cst_22 = arith.constant dense<0xFF800000> : vector<32xf32>
    %49 = vector.multi_reduction <maximumf>, %48, %cst_22 [1] : vector<32x32xf32> to vector<32xf32>
    %50 = vector.shape_cast %49 : vector<32xf32> to vector<32x1xf32>
    %51 = vector.broadcast %50 : vector<32x1xf32> to vector<32x32xf32>
    %52 = arith.subf %48, %51 : vector<32x32xf32>
    %53 = math.exp %52 : vector<32x32xf32>
    %cst_23 = arith.constant dense<0.000000e+00> : vector<32xf32>
    %54 = vector.multi_reduction <add>, %53, %cst_23 [1] : vector<32x32xf32> to vector<32xf32>
    %55 = vector.shape_cast %54 : vector<32xf32> to vector<32x1xf32>
    %56 = arith.truncf %53 : vector<32x32xf32> to vector<32x32xbf16>
    %57 = arith.truncf %42 : vector<32x16xf32> to vector<32x16xbf16>
    %cst_24 = arith.constant dense<0.000000e+00> : vector<32x16xf32>
    %58 = tpu.matmul %56, %57, %cst_24 {dimension_numbers = #tpu.dot_dimension_numbers<[1], [0], [0], [1], [0, 0, 1, 1], [], []>} : vector<32x32xbf16>, vector<32x16xbf16>, vector<32x16xf32> -> vector<32x16xf32>
    %59 = tpu.reciprocal %55 {approx = true} : vector<32x1xf32> -> vector<32x1xf32>
    %60 = vector.broadcast %59 : vector<32x1xf32> to vector<32x16xf32>
    %61 = arith.mulf %58, %60 : vector<32x16xf32>
    %62 = arith.truncf %61 : vector<32x16xf32> to vector<32x16xbf16>
    %63 = vector.extract_strided_slice %39 {offsets = [0, 0], sizes = [16, 64], strides = [1, 1]} : vector<64x64xbf16> to vector<16x64xbf16>
    %cst_25 = arith.constant dense<0.000000e+00> : vector<32x64xf32>
    %64 = tpu.matmul %62, %63, %cst_25 {dimension_numbers = #tpu.dot_dimension_numbers<[1], [0], [0], [1], [0, 0, 1, 1], [], []>} : vector<32x16xbf16>, vector<16x64xbf16>, vector<32x64xf32> -> vector<32x64xf32>
    %65 = vector.broadcast %2 : vector<1x64xf32> to vector<32x64xf32>
    %66 = arith.addf %65, %64 : vector<32x64xf32>
    %67 = vector.extract_strided_slice %35 {offsets = [0, 16], sizes = [32, 16], strides = [1, 1]} : vector<64x192xf32> to vector<32x16xf32>
    %68 = vector.extract_strided_slice %35 {offsets = [0, 80], sizes = [32, 16], strides = [1, 1]} : vector<64x192xf32> to vector<32x16xf32>
    %69 = vector.extract_strided_slice %35 {offsets = [0, 144], sizes = [32, 16], strides = [1, 1]} : vector<64x192xf32> to vector<32x16xf32>
    %70 = arith.truncf %67 : vector<32x16xf32> to vector<32x16xbf16>
    %71 = arith.truncf %68 : vector<32x16xf32> to vector<32x16xbf16>
    %cst_26 = arith.constant dense<0.000000e+00> : vector<32x32xf32>
    %72 = tpu.matmul %70, %71, %cst_26 {dimension_numbers = #tpu.dot_dimension_numbers<[1], [1], [0], [0], [0, 0, 1, 0], [], []>} : vector<32x16xbf16>, vector<32x16xbf16>, vector<32x32xf32> -> vector<32x32xf32>
    %cst_27 = arith.constant 1.000000e+09 : f32
    %73 = vector.broadcast %cst_27 : f32 to vector<32x32xf32>
    %74 = arith.subf %72, %73 : vector<32x32xf32>
    %75 = arith.select %38, %72, %74 : vector<32x32xi1>, vector<32x32xf32>
    %cst_28 = arith.constant dense<0xFF800000> : vector<32xf32>
    %76 = vector.multi_reduction <maximumf>, %75, %cst_28 [1] : vector<32x32xf32> to vector<32xf32>
    %77 = vector.shape_cast %76 : vector<32xf32> to vector<32x1xf32>
    %78 = vector.broadcast %77 : vector<32x1xf32> to vector<32x32xf32>
    %79 = arith.subf %75, %78 : vector<32x32xf32>
    %80 = math.exp %79 : vector<32x32xf32>
    %cst_29 = arith.constant dense<0.000000e+00> : vector<32xf32>
    %81 = vector.multi_reduction <add>, %80, %cst_29 [1] : vector<32x32xf32> to vector<32xf32>
    %82 = vector.shape_cast %81 : vector<32xf32> to vector<32x1xf32>
    %83 = arith.truncf %80 : vector<32x32xf32> to vector<32x32xbf16>
    %84 = arith.truncf %69 : vector<32x16xf32> to vector<32x16xbf16>
    %cst_30 = arith.constant dense<0.000000e+00> : vector<32x16xf32>
    %85 = tpu.matmul %83, %84, %cst_30 {dimension_numbers = #tpu.dot_dimension_numbers<[1], [0], [0], [1], [0, 0, 1, 1], [], []>} : vector<32x32xbf16>, vector<32x16xbf16>, vector<32x16xf32> -> vector<32x16xf32>
    %86 = tpu.reciprocal %82 {approx = true} : vector<32x1xf32> -> vector<32x1xf32>
    %87 = vector.broadcast %86 : vector<32x1xf32> to vector<32x16xf32>
    %88 = arith.mulf %85, %87 : vector<32x16xf32>
    %89 = arith.truncf %88 : vector<32x16xf32> to vector<32x16xbf16>
    %90 = vector.extract_strided_slice %39 {offsets = [16, 0], sizes = [16, 64], strides = [1, 1]} : vector<64x64xbf16> to vector<16x64xbf16>
    %cst_31 = arith.constant dense<0.000000e+00> : vector<32x64xf32>
    %91 = tpu.matmul %89, %90, %cst_31 {dimension_numbers = #tpu.dot_dimension_numbers<[1], [0], [0], [1], [0, 0, 1, 1], [], []>} : vector<32x16xbf16>, vector<16x64xbf16>, vector<32x64xf32> -> vector<32x64xf32>
    %92 = arith.addf %66, %91 : vector<32x64xf32>
    %93 = vector.extract_strided_slice %35 {offsets = [0, 32], sizes = [32, 16], strides = [1, 1]} : vector<64x192xf32> to vector<32x16xf32>
    %94 = vector.extract_strided_slice %35 {offsets = [0, 96], sizes = [32, 16], strides = [1, 1]} : vector<64x192xf32> to vector<32x16xf32>
    %95 = vector.extract_strided_slice %35 {offsets = [0, 160], sizes = [32, 16], strides = [1, 1]} : vector<64x192xf32> to vector<32x16xf32>
    %96 = arith.truncf %93 : vector<32x16xf32> to vector<32x16xbf16>
    %97 = arith.truncf %94 : vector<32x16xf32> to vector<32x16xbf16>
    %cst_32 = arith.constant dense<0.000000e+00> : vector<32x32xf32>
    %98 = tpu.matmul %96, %97, %cst_32 {dimension_numbers = #tpu.dot_dimension_numbers<[1], [1], [0], [0], [0, 0, 1, 0], [], []>} : vector<32x16xbf16>, vector<32x16xbf16>, vector<32x32xf32> -> vector<32x32xf32>
    %cst_33 = arith.constant 1.000000e+09 : f32
    %99 = vector.broadcast %cst_33 : f32 to vector<32x32xf32>
    %100 = arith.subf %98, %99 : vector<32x32xf32>
    %101 = arith.select %38, %98, %100 : vector<32x32xi1>, vector<32x32xf32>
    %cst_34 = arith.constant dense<0xFF800000> : vector<32xf32>
    %102 = vector.multi_reduction <maximumf>, %101, %cst_34 [1] : vector<32x32xf32> to vector<32xf32>
    %103 = vector.shape_cast %102 : vector<32xf32> to vector<32x1xf32>
    %104 = vector.broadcast %103 : vector<32x1xf32> to vector<32x32xf32>
    %105 = arith.subf %101, %104 : vector<32x32xf32>
    %106 = math.exp %105 : vector<32x32xf32>
    %cst_35 = arith.constant dense<0.000000e+00> : vector<32xf32>
    %107 = vector.multi_reduction <add>, %106, %cst_35 [1] : vector<32x32xf32> to vector<32xf32>
    %108 = vector.shape_cast %107 : vector<32xf32> to vector<32x1xf32>
    %109 = arith.truncf %106 : vector<32x32xf32> to vector<32x32xbf16>
    %110 = arith.truncf %95 : vector<32x16xf32> to vector<32x16xbf16>
    %cst_36 = arith.constant dense<0.000000e+00> : vector<32x16xf32>
    %111 = tpu.matmul %109, %110, %cst_36 {dimension_numbers = #tpu.dot_dimension_numbers<[1], [0], [0], [1], [0, 0, 1, 1], [], []>} : vector<32x32xbf16>, vector<32x16xbf16>, vector<32x16xf32> -> vector<32x16xf32>
    %112 = tpu.reciprocal %108 {approx = true} : vector<32x1xf32> -> vector<32x1xf32>
    %113 = vector.broadcast %112 : vector<32x1xf32> to vector<32x16xf32>
    %114 = arith.mulf %111, %113 : vector<32x16xf32>
    %115 = arith.truncf %114 : vector<32x16xf32> to vector<32x16xbf16>
    %116 = vector.extract_strided_slice %39 {offsets = [32, 0], sizes = [16, 64], strides = [1, 1]} : vector<64x64xbf16> to vector<16x64xbf16>
    %cst_37 = arith.constant dense<0.000000e+00> : vector<32x64xf32>
    %117 = tpu.matmul %115, %116, %cst_37 {dimension_numbers = #tpu.dot_dimension_numbers<[1], [0], [0], [1], [0, 0, 1, 1], [], []>} : vector<32x16xbf16>, vector<16x64xbf16>, vector<32x64xf32> -> vector<32x64xf32>
    %118 = arith.addf %92, %117 : vector<32x64xf32>
    %119 = vector.extract_strided_slice %35 {offsets = [0, 48], sizes = [32, 16], strides = [1, 1]} : vector<64x192xf32> to vector<32x16xf32>
    %120 = vector.extract_strided_slice %35 {offsets = [0, 112], sizes = [32, 16], strides = [1, 1]} : vector<64x192xf32> to vector<32x16xf32>
    %121 = vector.extract_strided_slice %35 {offsets = [0, 176], sizes = [32, 16], strides = [1, 1]} : vector<64x192xf32> to vector<32x16xf32>
    %122 = arith.truncf %119 : vector<32x16xf32> to vector<32x16xbf16>
    %123 = arith.truncf %120 : vector<32x16xf32> to vector<32x16xbf16>
    %cst_38 = arith.constant dense<0.000000e+00> : vector<32x32xf32>
    %124 = tpu.matmul %122, %123, %cst_38 {dimension_numbers = #tpu.dot_dimension_numbers<[1], [1], [0], [0], [0, 0, 1, 0], [], []>} : vector<32x16xbf16>, vector<32x16xbf16>, vector<32x32xf32> -> vector<32x32xf32>
    %cst_39 = arith.constant 1.000000e+09 : f32
    %125 = vector.broadcast %cst_39 : f32 to vector<32x32xf32>
    %126 = arith.subf %124, %125 : vector<32x32xf32>
    %127 = arith.select %38, %124, %126 : vector<32x32xi1>, vector<32x32xf32>
    %cst_40 = arith.constant dense<0xFF800000> : vector<32xf32>
    %128 = vector.multi_reduction <maximumf>, %127, %cst_40 [1] : vector<32x32xf32> to vector<32xf32>
    %129 = vector.shape_cast %128 : vector<32xf32> to vector<32x1xf32>
    %130 = vector.broadcast %129 : vector<32x1xf32> to vector<32x32xf32>
    %131 = arith.subf %127, %130 : vector<32x32xf32>
    %132 = math.exp %131 : vector<32x32xf32>
    %cst_41 = arith.constant dense<0.000000e+00> : vector<32xf32>
    %133 = vector.multi_reduction <add>, %132, %cst_41 [1] : vector<32x32xf32> to vector<32xf32>
    %134 = vector.shape_cast %133 : vector<32xf32> to vector<32x1xf32>
    %135 = arith.truncf %132 : vector<32x32xf32> to vector<32x32xbf16>
    %136 = arith.truncf %121 : vector<32x16xf32> to vector<32x16xbf16>
    %cst_42 = arith.constant dense<0.000000e+00> : vector<32x16xf32>
    %137 = tpu.matmul %135, %136, %cst_42 {dimension_numbers = #tpu.dot_dimension_numbers<[1], [0], [0], [1], [0, 0, 1, 1], [], []>} : vector<32x32xbf16>, vector<32x16xbf16>, vector<32x16xf32> -> vector<32x16xf32>
    %138 = tpu.reciprocal %134 {approx = true} : vector<32x1xf32> -> vector<32x1xf32>
    %139 = vector.broadcast %138 : vector<32x1xf32> to vector<32x16xf32>
    %140 = arith.mulf %137, %139 : vector<32x16xf32>
    %141 = arith.truncf %140 : vector<32x16xf32> to vector<32x16xbf16>
    %142 = vector.extract_strided_slice %39 {offsets = [48, 0], sizes = [16, 64], strides = [1, 1]} : vector<64x64xbf16> to vector<16x64xbf16>
    %cst_43 = arith.constant dense<0.000000e+00> : vector<32x64xf32>
    %143 = tpu.matmul %141, %142, %cst_43 {dimension_numbers = #tpu.dot_dimension_numbers<[1], [0], [0], [1], [0, 0, 1, 1], [], []>} : vector<32x16xbf16>, vector<16x64xbf16>, vector<32x64xf32> -> vector<32x64xf32>
    %144 = arith.addf %118, %143 : vector<32x64xf32>
    %c0_44 = arith.constant 0 : index
    %c0_45 = arith.constant 0 : index
    %c0_46 = arith.constant 0 : index
    %145 = vector.load %arg0[%c0_44, %c0_45, %c0_46] : memref<2x64x32xf32, #tpu.memory_space<vmem>>, vector<1x64x32xf32>
    %146 = vector.shape_cast %145 : vector<1x64x32xf32> to vector<64x32xf32>
    %147 = tpu.transpose %144, [1, 0] : vector<32x64xf32> -> vector<64x32xf32>
    %148 = arith.addf %146, %147 : vector<64x32xf32>
    %c0_47 = arith.constant 0 : index
    %c0_48 = arith.constant 0 : index
    %c0_49 = arith.constant 0 : index
    %149 = vector.load %arg5[%c0_47, %c0_48, %c0_49] : memref<2x64x32xf32, #tpu.memory_space<vmem>>, vector<1x64x32xf32>
    %150 = vector.shape_cast %149 : vector<1x64x32xf32> to vector<64x32xf32>
    %151 = vector.shape_cast %148 : vector<64x32xf32> to vector<1x64x32xf32>
    tpu.vector_store %arg5[%c0_47, %c0_48, %c0_49], %151 {strides = array<i32>} : memref<2x64x32xf32, #tpu.memory_space<vmem>>, vector<1x64x32xf32>,
    %152 = vector.extract_strided_slice %35 {offsets = [32, 0], sizes = [32, 16], strides = [1, 1]} : vector<64x192xf32> to vector<32x16xf32>
    %153 = vector.extract_strided_slice %35 {offsets = [32, 64], sizes = [32, 16], strides = [1, 1]} : vector<64x192xf32> to vector<32x16xf32>
    %154 = vector.extract_strided_slice %35 {offsets = [32, 128], sizes = [32, 16], strides = [1, 1]} : vector<64x192xf32> to vector<32x16xf32>
    %155 = arith.truncf %152 : vector<32x16xf32> to vector<32x16xbf16>
    %156 = arith.truncf %153 : vector<32x16xf32> to vector<32x16xbf16>
    %cst_50 = arith.constant dense<0.000000e+00> : vector<32x32xf32>
    %157 = tpu.matmul %155, %156, %cst_50 {dimension_numbers = #tpu.dot_dimension_numbers<[1], [1], [0], [0], [0, 0, 1, 0], [], []>} : vector<32x16xbf16>, vector<32x16xbf16>, vector<32x32xf32> -> vector<32x32xf32>
    %cst_51 = arith.constant 1.000000e+09 : f32
    %158 = vector.broadcast %cst_51 : f32 to vector<32x32xf32>
    %159 = arith.subf %157, %158 : vector<32x32xf32>
    %160 = arith.select %38, %157, %159 : vector<32x32xi1>, vector<32x32xf32>
    %cst_52 = arith.constant dense<0xFF800000> : vector<32xf32>
    %161 = vector.multi_reduction <maximumf>, %160, %cst_52 [1] : vector<32x32xf32> to vector<32xf32>
    %162 = vector.shape_cast %161 : vector<32xf32> to vector<32x1xf32>
    %163 = vector.broadcast %162 : vector<32x1xf32> to vector<32x32xf32>
    %164 = arith.subf %160, %163 : vector<32x32xf32>
    %165 = math.exp %164 : vector<32x32xf32>
    %cst_53 = arith.constant dense<0.000000e+00> : vector<32xf32>
    %166 = vector.multi_reduction <add>, %165, %cst_53 [1] : vector<32x32xf32> to vector<32xf32>
    %167 = vector.shape_cast %166 : vector<32xf32> to vector<32x1xf32>
    %168 = arith.truncf %165 : vector<32x32xf32> to vector<32x32xbf16>
    %169 = arith.truncf %154 : vector<32x16xf32> to vector<32x16xbf16>
    %cst_54 = arith.constant dense<0.000000e+00> : vector<32x16xf32>
    %170 = tpu.matmul %168, %169, %cst_54 {dimension_numbers = #tpu.dot_dimension_numbers<[1], [0], [0], [1], [0, 0, 1, 1], [], []>} : vector<32x32xbf16>, vector<32x16xbf16>, vector<32x16xf32> -> vector<32x16xf32>
    %171 = tpu.reciprocal %167 {approx = true} : vector<32x1xf32> -> vector<32x1xf32>
    %172 = vector.broadcast %171 : vector<32x1xf32> to vector<32x16xf32>
    %173 = arith.mulf %170, %172 : vector<32x16xf32>
    %174 = arith.truncf %173 : vector<32x16xf32> to vector<32x16xbf16>
    %175 = vector.extract_strided_slice %39 {offsets = [0, 0], sizes = [16, 64], strides = [1, 1]} : vector<64x64xbf16> to vector<16x64xbf16>
    %cst_55 = arith.constant dense<0.000000e+00> : vector<32x64xf32>
    %176 = tpu.matmul %174, %175, %cst_55 {dimension_numbers = #tpu.dot_dimension_numbers<[1], [0], [0], [1], [0, 0, 1, 1], [], []>} : vector<32x16xbf16>, vector<16x64xbf16>, vector<32x64xf32> -> vector<32x64xf32>
    %177 = vector.broadcast %2 : vector<1x64xf32> to vector<32x64xf32>
    %178 = arith.addf %177, %176 : vector<32x64xf32>
    %179 = vector.extract_strided_slice %35 {offsets = [32, 16], sizes = [32, 16], strides = [1, 1]} : vector<64x192xf32> to vector<32x16xf32>
    %180 = vector.extract_strided_slice %35 {offsets = [32, 80], sizes = [32, 16], strides = [1, 1]} : vector<64x192xf32> to vector<32x16xf32>
    %181 = vector.extract_strided_slice %35 {offsets = [32, 144], sizes = [32, 16], strides = [1, 1]} : vector<64x192xf32> to vector<32x16xf32>
    %182 = arith.truncf %179 : vector<32x16xf32> to vector<32x16xbf16>
    %183 = arith.truncf %180 : vector<32x16xf32> to vector<32x16xbf16>
    %cst_56 = arith.constant dense<0.000000e+00> : vector<32x32xf32>
    %184 = tpu.matmul %182, %183, %cst_56 {dimension_numbers = #tpu.dot_dimension_numbers<[1], [1], [0], [0], [0, 0, 1, 0], [], []>} : vector<32x16xbf16>, vector<32x16xbf16>, vector<32x32xf32> -> vector<32x32xf32>
    %cst_57 = arith.constant 1.000000e+09 : f32
    %185 = vector.broadcast %cst_57 : f32 to vector<32x32xf32>
    %186 = arith.subf %184, %185 : vector<32x32xf32>
    %187 = arith.select %38, %184, %186 : vector<32x32xi1>, vector<32x32xf32>
    %cst_58 = arith.constant dense<0xFF800000> : vector<32xf32>
    %188 = vector.multi_reduction <maximumf>, %187, %cst_58 [1] : vector<32x32xf32> to vector<32xf32>
    %189 = vector.shape_cast %188 : vector<32xf32> to vector<32x1xf32>
    %190 = vector.broadcast %189 : vector<32x1xf32> to vector<32x32xf32>
    %191 = arith.subf %187, %190 : vector<32x32xf32>
    %192 = math.exp %191 : vector<32x32xf32>
    %cst_59 = arith.constant dense<0.000000e+00> : vector<32xf32>
    %193 = vector.multi_reduction <add>, %192, %cst_59 [1] : vector<32x32xf32> to vector<32xf32>
    %194 = vector.shape_cast %193 : vector<32xf32> to vector<32x1xf32>
    %195 = arith.truncf %192 : vector<32x32xf32> to vector<32x32xbf16>
    %196 = arith.truncf %181 : vector<32x16xf32> to vector<32x16xbf16>
    %cst_60 = arith.constant dense<0.000000e+00> : vector<32x16xf32>
    %197 = tpu.matmul %195, %196, %cst_60 {dimension_numbers = #tpu.dot_dimension_numbers<[1], [0], [0], [1], [0, 0, 1, 1], [], []>} : vector<32x32xbf16>, vector<32x16xbf16>, vector<32x16xf32> -> vector<32x16xf32>
    %198 = tpu.reciprocal %194 {approx = true} : vector<32x1xf32> -> vector<32x1xf32>
    %199 = vector.broadcast %198 : vector<32x1xf32> to vector<32x16xf32>
    %200 = arith.mulf %197, %199 : vector<32x16xf32>
    %201 = arith.truncf %200 : vector<32x16xf32> to vector<32x16xbf16>
    %202 = vector.extract_strided_slice %39 {offsets = [16, 0], sizes = [16, 64], strides = [1, 1]} : vector<64x64xbf16> to vector<16x64xbf16>
    %cst_61 = arith.constant dense<0.000000e+00> : vector<32x64xf32>
    %203 = tpu.matmul %201, %202, %cst_61 {dimension_numbers = #tpu.dot_dimension_numbers<[1], [0], [0], [1], [0, 0, 1, 1], [], []>} : vector<32x16xbf16>, vector<16x64xbf16>, vector<32x64xf32> -> vector<32x64xf32>
    %204 = arith.addf %178, %203 : vector<32x64xf32>
    %205 = vector.extract_strided_slice %35 {offsets = [32, 32], sizes = [32, 16], strides = [1, 1]} : vector<64x192xf32> to vector<32x16xf32>
    %206 = vector.extract_strided_slice %35 {offsets = [32, 96], sizes = [32, 16], strides = [1, 1]} : vector<64x192xf32> to vector<32x16xf32>
    %207 = vector.extract_strided_slice %35 {offsets = [32, 160], sizes = [32, 16], strides = [1, 1]} : vector<64x192xf32> to vector<32x16xf32>
    %208 = arith.truncf %205 : vector<32x16xf32> to vector<32x16xbf16>
    %209 = arith.truncf %206 : vector<32x16xf32> to vector<32x16xbf16>
    %cst_62 = arith.constant dense<0.000000e+00> : vector<32x32xf32>
    %210 = tpu.matmul %208, %209, %cst_62 {dimension_numbers = #tpu.dot_dimension_numbers<[1], [1], [0], [0], [0, 0, 1, 0], [], []>} : vector<32x16xbf16>, vector<32x16xbf16>, vector<32x32xf32> -> vector<32x32xf32>
    %cst_63 = arith.constant 1.000000e+09 : f32
    %211 = vector.broadcast %cst_63 : f32 to vector<32x32xf32>
    %212 = arith.subf %210, %211 : vector<32x32xf32>
    %213 = arith.select %38, %210, %212 : vector<32x32xi1>, vector<32x32xf32>
    %cst_64 = arith.constant dense<0xFF800000> : vector<32xf32>
    %214 = vector.multi_reduction <maximumf>, %213, %cst_64 [1] : vector<32x32xf32> to vector<32xf32>
    %215 = vector.shape_cast %214 : vector<32xf32> to vector<32x1xf32>
    %216 = vector.broadcast %215 : vector<32x1xf32> to vector<32x32xf32>
    %217 = arith.subf %213, %216 : vector<32x32xf32>
    %218 = math.exp %217 : vector<32x32xf32>
    %cst_65 = arith.constant dense<0.000000e+00> : vector<32xf32>
    %219 = vector.multi_reduction <add>, %218, %cst_65 [1] : vector<32x32xf32> to vector<32xf32>
    %220 = vector.shape_cast %219 : vector<32xf32> to vector<32x1xf32>
    %221 = arith.truncf %218 : vector<32x32xf32> to vector<32x32xbf16>
    %222 = arith.truncf %207 : vector<32x16xf32> to vector<32x16xbf16>
    %cst_66 = arith.constant dense<0.000000e+00> : vector<32x16xf32>
    %223 = tpu.matmul %221, %222, %cst_66 {dimension_numbers = #tpu.dot_dimension_numbers<[1], [0], [0], [1], [0, 0, 1, 1], [], []>} : vector<32x32xbf16>, vector<32x16xbf16>, vector<32x16xf32> -> vector<32x16xf32>
    %224 = tpu.reciprocal %220 {approx = true} : vector<32x1xf32> -> vector<32x1xf32>
    %225 = vector.broadcast %224 : vector<32x1xf32> to vector<32x16xf32>
    %226 = arith.mulf %223, %225 : vector<32x16xf32>
    %227 = arith.truncf %226 : vector<32x16xf32> to vector<32x16xbf16>
    %228 = vector.extract_strided_slice %39 {offsets = [32, 0], sizes = [16, 64], strides = [1, 1]} : vector<64x64xbf16> to vector<16x64xbf16>
    %cst_67 = arith.constant dense<0.000000e+00> : vector<32x64xf32>
    %229 = tpu.matmul %227, %228, %cst_67 {dimension_numbers = #tpu.dot_dimension_numbers<[1], [0], [0], [1], [0, 0, 1, 1], [], []>} : vector<32x16xbf16>, vector<16x64xbf16>, vector<32x64xf32> -> vector<32x64xf32>
    %230 = arith.addf %204, %229 : vector<32x64xf32>
    %231 = vector.extract_strided_slice %35 {offsets = [32, 48], sizes = [32, 16], strides = [1, 1]} : vector<64x192xf32> to vector<32x16xf32>
    %232 = vector.extract_strided_slice %35 {offsets = [32, 112], sizes = [32, 16], strides = [1, 1]} : vector<64x192xf32> to vector<32x16xf32>
    %233 = vector.extract_strided_slice %35 {offsets = [32, 176], sizes = [32, 16], strides = [1, 1]} : vector<64x192xf32> to vector<32x16xf32>
    %234 = arith.truncf %231 : vector<32x16xf32> to vector<32x16xbf16>
    %235 = arith.truncf %232 : vector<32x16xf32> to vector<32x16xbf16>
    %cst_68 = arith.constant dense<0.000000e+00> : vector<32x32xf32>
    %236 = tpu.matmul %234, %235, %cst_68 {dimension_numbers = #tpu.dot_dimension_numbers<[1], [1], [0], [0], [0, 0, 1, 0], [], []>} : vector<32x16xbf16>, vector<32x16xbf16>, vector<32x32xf32> -> vector<32x32xf32>
    %cst_69 = arith.constant 1.000000e+09 : f32
    %237 = vector.broadcast %cst_69 : f32 to vector<32x32xf32>
    %238 = arith.subf %236, %237 : vector<32x32xf32>
    %239 = arith.select %38, %236, %238 : vector<32x32xi1>, vector<32x32xf32>
    %cst_70 = arith.constant dense<0xFF800000> : vector<32xf32>
    %240 = vector.multi_reduction <maximumf>, %239, %cst_70 [1] : vector<32x32xf32> to vector<32xf32>
    %241 = vector.shape_cast %240 : vector<32xf32> to vector<32x1xf32>
    %242 = vector.broadcast %241 : vector<32x1xf32> to vector<32x32xf32>
    %243 = arith.subf %239, %242 : vector<32x32xf32>
    %244 = math.exp %243 : vector<32x32xf32>
    %cst_71 = arith.constant dense<0.000000e+00> : vector<32xf32>
    %245 = vector.multi_reduction <add>, %244, %cst_71 [1] : vector<32x32xf32> to vector<32xf32>
    %246 = vector.shape_cast %245 : vector<32xf32> to vector<32x1xf32>
    %247 = arith.truncf %244 : vector<32x32xf32> to vector<32x32xbf16>
    %248 = arith.truncf %233 : vector<32x16xf32> to vector<32x16xbf16>
    %cst_72 = arith.constant dense<0.000000e+00> : vector<32x16xf32>
    %249 = tpu.matmul %247, %248, %cst_72 {dimension_numbers = #tpu.dot_dimension_numbers<[1], [0], [0], [1], [0, 0, 1, 1], [], []>} : vector<32x32xbf16>, vector<32x16xbf16>, vector<32x16xf32> -> vector<32x16xf32>
    %250 = tpu.reciprocal %246 {approx = true} : vector<32x1xf32> -> vector<32x1xf32>
    %251 = vector.broadcast %250 : vector<32x1xf32> to vector<32x16xf32>
    %252 = arith.mulf %249, %251 : vector<32x16xf32>
    %253 = arith.truncf %252 : vector<32x16xf32> to vector<32x16xbf16>
    %254 = vector.extract_strided_slice %39 {offsets = [48, 0], sizes = [16, 64], strides = [1, 1]} : vector<64x64xbf16> to vector<16x64xbf16>
    %cst_73 = arith.constant dense<0.000000e+00> : vector<32x64xf32>
    %255 = tpu.matmul %253, %254, %cst_73 {dimension_numbers = #tpu.dot_dimension_numbers<[1], [0], [0], [1], [0, 0, 1, 1], [], []>} : vector<32x16xbf16>, vector<16x64xbf16>, vector<32x64xf32> -> vector<32x64xf32>
    %256 = arith.addf %230, %255 : vector<32x64xf32>
    %c1_74 = arith.constant 1 : index
    %c0_75 = arith.constant 0 : index
    %c0_76 = arith.constant 0 : index
    %257 = vector.load %arg0[%c1_74, %c0_75, %c0_76] : memref<2x64x32xf32, #tpu.memory_space<vmem>>, vector<1x64x32xf32>
    %258 = vector.shape_cast %257 : vector<1x64x32xf32> to vector<64x32xf32>
    %259 = tpu.transpose %256, [1, 0] : vector<32x64xf32> -> vector<64x32xf32>
    %260 = arith.addf %258, %259 : vector<64x32xf32>
    %c1_77 = arith.constant 1 : index
    %c0_78 = arith.constant 0 : index
    %c0_79 = arith.constant 0 : index
    %261 = vector.load %arg5[%c1_77, %c0_78, %c0_79] : memref<2x64x32xf32, #tpu.memory_space<vmem>>, vector<1x64x32xf32>
    %262 = vector.shape_cast %261 : vector<1x64x32xf32> to vector<64x32xf32>
    %263 = vector.shape_cast %260 : vector<64x32xf32> to vector<1x64x32xf32>
    tpu.vector_store %arg5[%c1_77, %c0_78, %c0_79], %263 {strides = array<i32>} : memref<2x64x32xf32, #tpu.memory_space<vmem>>, vector<1x64x32xf32>,
    return
  }
}

</mosaic_0001>

<bundles_post_ra>
// kernel: self_attention_forward.1
= control target key start
LH: loop header
LB: loop body
LE: loop exit
PB: predicated region body
PF: predicated region fallthrough
CT: control target
= control target key end

     0   :  { %vm105_vm0 = vcmask 523264   ;;  %v2164_v16 = vmov 64.0   ;;  %s2165_s21 = smov 112   ;;  %s2166_s22 = smov 64   ;;  %vm462_vm14 = vcmask 130048   ;;  %s2978_s0 = inlined_call_operand.vmem [shape: f32[2,64,32], index: 0, kind: input, shape index: {}]   ;;  %s2979_s4 = inlined_call_operand.vmem [shape: f32[3,64], index: 4, kind: input, shape index: {}]   ;;  %s2980_s1 = inlined_call_operand.vmem [shape: bf16[64,192], index: 1, kind: input, shape index: {}]   ;;  %s2981_s2 = inlined_call_operand.vmem [shape: f32[1,192], index: 2, kind: input, shape index: {}]   ;;  %s2982_s3 = inlined_call_operand.vmem [shape: bf16[64,64], index: 3, kind: input, shape index: {}]   ;;  %s2983_s5 = inlined_call_operand.vmem [shape: f32[2,64,32], index: 5, kind: output, shape index: {}]  }
   0x1   :  { %v24_v0 = vld [vmem:[%s2978_s0] sm:$0xff]  ;;  %v25_v1 = vld [vmem:[%s2978_s0 + $0x8] sm:$0xff]  ;;  %v26_v2 = vld [vmem:[%s2978_s0 + $0x10] sm:$0xff]  ;;  %2010 = vrcp.f32 %v2164_v16  ;;  %s2169_s18 = smov 32   ;;  %s2170_s19 = smov 96  }
   0x2   :  { %32 = vxpose.xlu0.b32.start [1/8] (short) (narrow) %v24_v0, 32  ;;  %v27_v3 = vld [vmem:[%s2978_s0 + $0x18] sm:$0xff]  ;;  %v28_v4 = vld [vmem:[%s2978_s0 + $0x20] sm:$0xff]  ;;  %v29_v5 = vld [vmem:[%s2978_s0 + $0x28] sm:$0xff]  ;;  %s2171_s20 = smov 80  }
   0x3   :  { %v30_v6 = vld [vmem:[%s2978_s0 + $0x30] sm:$0xff]  ;;  %v31_v7 = vld [vmem:[%s2978_s0 + $0x38] sm:$0xff]  ;;  %v1852_v49 = vld [vmem:[%s2980_s1 + $0x20] sm:$0xf] }
   0x4   :  { %v1860_v43 = vld [vmem:[%s2980_s1 + $0x30] sm:$0xf]  ;;  %v1993_v44 = vld [vmem:[%s2980_s1 + $0x34] sm:$0xf0]  ;;  %v1992_v45 = vld [vmem:[%s2980_s1 + $0x34] sm:$0xf] }
   0x5   :  { %v1861_v46 = vor.u32 %v1993_v44, %v1860_v43  ;;  %v1862_v47 = vld [vmem:[%s2980_s1 + $0x38] sm:$0xf0]  ;;  %v1991_v50 = vld [vmem:[%s2980_s1 + $0x24] sm:$0xf0]  ;;  %v1990_v51 = vld [vmem:[%s2980_s1 + $0x24] sm:$0xf] }
   0x6   :  { %v1865_v48 = vor.u32 %v1992_v45, %v1862_v47  ;;  %v1853_v52 = vor.u32 %v1991_v50, %v1852_v49  ;;  %v1854_v53 = vld [vmem:[%s2980_s1 + $0x28] sm:$0xf0]  ;;  %v1844_v55 = vld [vmem:[%s2980_s1 + $0x10] sm:$0xf]  ;;  %v1989_v56 = vld [vmem:[%s2980_s1 + $0x14] sm:$0xf0] }
   0x7   :  { %v2011_v17 = vpop.eup %2010  ;;  %381 = vmatpush.bf16.msra.mxu0 %v1861_v46  ;;  %v1857_v54 = vor.u32 %v1990_v51, %v1854_v53  ;;  %v1988_v57 = vld [vmem:[%s2980_s1 + $0x14] sm:$0xf]  ;;  %v1845_v58 = vor.u32 %v1989_v56, %v1844_v55  ;;  %v1846_v59 = vld [vmem:[%s2980_s1 + $0x18] sm:$0xf0]  ;;  %v1836_v63 = vld [vmem:[%s2980_s1] sm:$0xf] }
   0x8   :  { %v131_v18 = vmul.f32 64.0, %v2011_v17  ;;  %vm135_vm1 = vweird.f32 %v2011_v17  ;;  %410 = vmatpush.bf16.msra.mxu1 %v1865_v48  ;;  %v1849_v60 = vor.u32 %v1988_v57, %v1846_v59  ;;  %v1987_v0 = vld [vmem:[%s2980_s1 + $0x4] sm:$0xf0] }
   0xa   :  { %33 = vxpose.xlu0.b32.cont [2/8] (short) (narrow) %v25_v1, 32  ;;  %v132_v19 = vsub.f32 1.0, %v131_v18  ;;  %v1986_v1 = vld [vmem:[%s2980_s1 + $0x4] sm:$0xf] }
   0xb   :  { %382 = vmatpush.bf16.msra.mxu0 %v1853_v52 }
   0xc   :  { %v133_v20 = vmul.f32 %v2011_v17, %v132_v19  ;;  %411 = vmatpush.bf16.msra.mxu1 %v1857_v54 }
   0xe   :  { %v134_v21 = vadd.f32 %v2011_v17, %v133_v20 }
   0xf   :  { %383 = vmatpush.bf16.msra.mxu0 %v1845_v58 }
  0x10   :  { %v2230_v22 = vsel %vm135_vm1, %v2011_v17, %v134_v21  ;;  %412 = vmatpush.bf16.msra.mxu1 %v1849_v60  ;;  %vm502_vm1 = vcmask 261120  }
  0x12   :  { %34 = vxpose.xlu0.b32.cont [3/8] (short) (narrow) %v26_v2, 32  ;;  %v1837_v2 = vor.u32 %v1987_v0, %v1836_v63  ;;  %v319_v63 = vld [vmem:[%s2981_s2] sm:$0x3]  ;;  %s2167_s2 = smov 48  }
  0x14   :  { %384 = vmatpush.bf16.msra.mxu0 %v1837_v2 }
  0x1a   :  { %35 = vxpose.xlu0.b32.cont [4/8] (short) (narrow) %v27_v3, 32  ;;  %v1838_v3 = vld [vmem:[%s2980_s1 + $0x8] sm:$0xf0]  ;;  %s2168_s1 = smov 16  }
  0x22   :  { %36 = vxpose.xlu0.b32.cont [5/8] (short) (narrow) %v28_v4, 32 }
  0x2a   :  { %37 = vxpose.xlu0.b32.cont [6/8] (short) (narrow) %v29_v5, 32  ;;  %v1841_v5 = vor.u32 %v1986_v1, %v1838_v3 }
  0x2c   :  { %413 = vmatpush.bf16.msra.mxu1 %v1841_v5 }
  0x32   :  { %38 = vxpose.xlu0.b32.cont [7/8] (short) (narrow) %v30_v6, 32 }
  0x3a   :  { %39 = vxpose.xlu0.b32.end [8/8] (short) (narrow) %v31_v7, 32 }
  0xa6   :  { %v48_v8 = vpop.trf.xlu0 }
  0xa7   :  { %v106_v9 = vsel %vm105_vm0, %v48_v8, 0.0 }
  0xa8   :  { %107 = vadd.xlane.f32.xlu1 %v106_v9 }
  0xae   :  { %v49_v10 = vpop.trf.xlu0 }
  0xaf   :  { %v109_v11 = vsel %vm105_vm0, %v49_v10, 0.0 }
  0xb0   :  { %110 = vadd.xlane.f32.xlu1 %v109_v11 }
  0xb6   :  { %v50_v12 = vpop.trf.xlu0 }
  0xb7   :  { %v112_v13 = vsel %vm105_vm0, %v50_v12, 0.0 }
  0xb8   :  { %113 = vadd.xlane.f32.xlu2 %v112_v13 }
  0xbe   :  { %v51_v14 = vpop.trf.xlu0 }
  0xbf   :  { %v115_v15 = vsel %vm105_vm0, %v51_v14, 0.0 }
  0xc0   :  { %116 = vadd.xlane.f32.xlu2 %v115_v15 }
 0x11b   :  { %v108_v23 = vpop.xlane.xlu1 %107 }
 0x11c   :  { %v137_v24 = vmul.f32 %v2230_v22, %v108_v23 }
 0x11e   :  { %v2233_v25 = vsub.f32 %v48_v8, %v137_v24 }
 0x120   :  { %v153_v26 = vmul.f32 %v2233_v25, %v2233_v25 }
 0x122   :  { %v161_v27 = vsel %vm105_vm0, %v153_v26, 0.0 }
 0x123   :  { %162 = vadd.xlane.f32.xlu1 %v161_v27  ;;  %v111_v28 = vpop.xlane.xlu1 %110 }
 0x124   :  { %v138_v29 = vmul.f32 %v2230_v22, %v111_v28 }
 0x126   :  { %v2239_v30 = vsub.f32 %v49_v10, %v138_v29 }
 0x128   :  { %v154_v31 = vmul.f32 %v2239_v30, %v2239_v30 }
 0x12a   :  { %v164_v32 = vsel %vm105_vm0, %v154_v31, 0.0 }
 0x12b   :  { %v114_v33 = vpop.xlane.xlu2 %113  ;;  %165 = vadd.xlane.f32.xlu2 %v164_v32  ;;  %v2312_v32 = vld [vmem:[%s2979_s4] ss:$0 sm:$0xff] }
 0x12c   :  { %v139_v34 = vmul.f32 %v2230_v22, %v114_v33 }
 0x12e   :  { %v2245_v35 = vsub.f32 %v50_v12, %v139_v34 }
 0x130   :  { %v155_v36 = vmul.f32 %v2245_v35, %v2245_v35 }
 0x132   :  { %v167_v37 = vsel %vm105_vm0, %v155_v36, 0.0 }
 0x133   :  { %168 = vadd.xlane.f32.xlu1 %v167_v37  ;;  %v117_v38 = vpop.xlane.xlu2 %116 }
 0x134   :  { %v140_v39 = vmul.f32 %v2230_v22, %v117_v38 }
 0x136   :  { %v2251_v40 = vsub.f32 %v51_v14, %v140_v39 }
 0x138   :  { %v156_v41 = vmul.f32 %v2251_v40, %v2251_v40 }
 0x13a   :  { %v170_v42 = vsel %vm105_vm0, %v156_v41, 0.0 }
 0x13b   :  { %171 = vadd.xlane.f32.xlu2 %v170_v42 }
 0x196   :  { %v163_v61 = vpop.xlane.xlu1 %162 }
 0x197   :  { %v185_v62 = vmul.f32 %v163_v61, %v2230_v22 }
 0x199   :  { %v193_v4 = vadd.f32 1e-05, %v185_v62 }
 0x19b   :  { %2012 = vrsqrt.f32 %v193_v4  ;;  %vm207_vm3 = vweird.f32 %v193_v4 }
 0x19e   :  { %v166_v6 = vpop.xlane.xlu2 %165 }
 0x19f   :  { %v186_v7 = vmul.f32 %v166_v6, %v2230_v22 }
 0x1a1   :  { %v2013_v8 = vpop.eup %2012  ;;  %v194_v9 = vadd.f32 1e-05, %v186_v7  ;;  %v2347_v7 = vperm.slane %v319_v63, 1 }
 0x1a2   :  { %v202_v10 = vmul.f32 %v2013_v8, %v193_v4  ;;  %vm208_vm2 = vweird.f32 %v2013_v8 }
 0x1a3   :  { %2014 = vrsqrt.f32 %v194_v9  ;;  %vm209_vm4 = vmor %vm207_vm3, %vm208_vm2  ;;  %vm217_vm6 = vweird.f32 %v194_v9 }
 0x1a4   :  { %v203_v11 = vmul.f32 %v2013_v8, %v202_v10 }
 0x1a6   :  { %v204_v12 = vmul.f32 0.5, %v203_v11  ;;  %v169_v13 = vpop.xlane.xlu1 %168 }
 0x1a7   :  { %v187_v14 = vmul.f32 %v169_v13, %v2230_v22 }
 0x1a8   :  { %v205_v15 = vsub.f32 1.5, %v204_v12 }
 0x1a9   :  { %v2015_v16 = vpop.eup %2014  ;;  %v195_v17 = vadd.f32 1e-05, %v187_v14 }
 0x1aa   :  { %v206_v18 = vmul.f32 %v2013_v8, %v205_v15  ;;  %v212_v19 = vmul.f32 %v2015_v16, %v194_v9  ;;  %vm218_vm5 = vweird.f32 %v2015_v16 }
 0x1ab   :  { %2016 = vrsqrt.f32 %v195_v17  ;;  %vm219_vm7 = vmor %vm217_vm6, %vm218_vm5  ;;  %vm227_vm9 = vweird.f32 %v195_v17 }
 0x1ac   :  { %v213_v20 = vmul.f32 %v2015_v16, %v212_v19  ;;  %v210_v21 = vsel %vm209_vm4, %v2013_v8, %v206_v18 }
 0x1ad   :  { %v281_v31 = vmul.f32 %v210_v21, %v2233_v25  ;;  %v2319_v25 = vld [vmem:[%s2979_s4 + $0x1] ss:$0 sm:$0xff] }
 0x1ae   :  { %v214_v23 = vmul.f32 0.5, %v213_v20  ;;  %v172_v24 = vpop.xlane.xlu2 %171 }
 0x1af   :  { %v188_v26 = vmul.f32 %v172_v24, %v2230_v22  ;;  %v290_v39 = vmul.f32 %v2312_v32, %v281_v31  ;;  %v435_v31 = vlaneseq }
 0x1b0   :  { %v215_v27 = vsub.f32 1.5, %v214_v23 }
 0x1b1   :  { %v2017_v28 = vpop.eup %2016  ;;  %v196_v29 = vadd.f32 1e-05, %v188_v26  ;;  %v299_v45 = vadd.f32 %v2319_v25, %v290_v39 }
 0x1b2   :  { %v216_v33 = vmul.f32 %v2015_v16, %v215_v27  ;;  %v222_v34 = vmul.f32 %v2017_v28, %v195_v17  ;;  %vm228_vm8 = vweird.f32 %v2017_v28 }
 0x1b3   :  { %2018 = vrsqrt.f32 %v196_v29  ;;  %vm229_vm10 = vmor %vm227_vm9, %vm228_vm8  ;;  %vm237_vm12 = vweird.f32 %v196_v29 }
 0x1b4   :  { %v220_v36 = vsel %vm219_vm7, %v2015_v16, %v216_v33  ;;  %v223_v37 = vmul.f32 %v2017_v28, %v222_v34  ;;  %v436_v33 = vshrl.u32 %v435_v31, 7  ;;  %v441_v34 = vand.u32 127, %v435_v31 }
 0x1b5   :  { %v282_v38 = vmul.f32 %v220_v36, %v2239_v30 }
 0x1b6   :  { %v224_v41 = vmul.f32 0.5, %v223_v37  ;;  %vm2378_vm15 = vcmp.le.s32.totalorder %v441_v34, %v436_v33 }
 0x1b7   :  { %v291_v42 = vmul.f32 %v2312_v32, %v282_v38 }
 0x1b8   :  { %v225_v43 = vsub.f32 1.5, %v224_v41 }
 0x1b9   :  { %v2019_v44 = vpop.eup %2018  ;;  %v300_v46 = vadd.f32 %v2319_v25, %v291_v42  ;;  %v437_v42 = vadd.s32 8, %v436_v33 }
 0x1ba   :  { %v226_v47 = vmul.f32 %v2017_v28, %v225_v43  ;;  %v232_v48 = vmul.f32 %v2019_v44, %v196_v29  ;;  %vm238_vm11 = vweird.f32 %v2019_v44 }
 0x1bb   :  { %v307_v30 = vpack.c.bf16 %v300_v46, %v299_v45  ;;  %vm239_vm13 = vmor %vm237_vm12, %vm238_vm11  ;;  %vm2385_vm2 = vcmp.le.s32.totalorder %v441_v34, %v437_v42  ;;  %v1831_v42 = vld [vmem:[%s2978_s0 + $0x68] sm:$0xff] }
 0x1bc   :  { %v233_v49 = vmul.f32 %v2019_v44, %v232_v48  ;;  %v230_v50 = vsel %vm229_vm10, %v2017_v28, %v226_v47  ;;  %v438_v48 = vadd.s32 16, %v436_v33 }
 0x1bd   :  { %1866 = vmatmul.msk.bf16.vlgmr.msra.gmra.mxu0 %vm105_vm0, %v307_v30  ;;  %1870 = vmatmul.msk.bf16.vlgmr.msra.gmra.mxu1 %vm105_vm0, %v307_v30  ;;  %v283_v53 = vmul.f32 %v230_v50, %v2245_v35 }
 0x1be   :  { %v234_v51 = vmul.f32 0.5, %v233_v49  ;;  %vm2392_vm3 = vcmp.le.s32.totalorder %v441_v34, %v438_v48 }
 0x1bf   :  { %v292_v57 = vmul.f32 %v2312_v32, %v283_v53  ;;  %v439_v53 = vadd.s32 24, %v436_v33 }
 0x1c0   :  { %v235_v52 = vsub.f32 1.5, %v234_v51 }
 0x1c1   :  { %v301_v59 = vadd.f32 %v2319_v25, %v292_v57  ;;  %vm2399_vm4 = vcmp.le.s32.totalorder %v441_v34, %v439_v53  ;;  %v1826_v34 = vld [vmem:[%s2978_s0 + $0x40] sm:$0xff] }
 0x1c2   :  { %v236_v54 = vmul.f32 %v2019_v44, %v235_v52 }
 0x1c4   :  { %v240_v55 = vsel %vm239_vm13, %v2019_v44, %v236_v54 }
 0x1c5   :  { %v284_v56 = vmul.f32 %v240_v55, %v2251_v40  ;;  %v2337_v40 = vperm.slane %v319_v63, 0 }
 0x1c7   :  { %v293_v58 = vmul.f32 %v2312_v32, %v284_v56 }
 0x1c9   :  { %v302_v60 = vadd.f32 %v2319_v25, %v293_v58 }
 0x1cb   :  { %v308_v61 = vpack.c.bf16 %v302_v60, %v301_v59 }
 0x1cd   :  { %1867 = vmatmul.msk.bf16.gmra.mxu0 %vm105_vm0, %v308_v61  ;;  %1871 = vmatmul.msk.bf16.gmra.mxu1 %vm105_vm0, %v308_v61 }
 0x23a   :  { %v386_v35 = vpop.f32.mrf.mxu0  ;;  %v415_v62 = vpop.f32.mrf.mxu1 }
 0x23b   :  { %v387_v2 = vadd.f32 %v386_v35, %v2337_v40  ;;  %v416_v17 = vadd.f32 %v415_v62, %v2347_v7 }
 0x242   :  { %v388_v0 = vpop.f32.mrf.mxu0  ;;  %v417_v1 = vpop.f32.mrf.mxu1 }
 0x243   :  { %v389_v3 = vadd.f32 %v388_v0, %v2337_v40  ;;  %v418_v14 = vadd.f32 %v417_v1, %v2347_v7 }
 0x245   :  { %v2341_v4 = vpack.c.bf16 %v389_v3, %v387_v2  ;;  %v2364_v18 = vpack.c.bf16 %v418_v14, %v416_v17 }
 0x247   :  { %614 = vrot.lane.b32.xlu0 %v2341_v4, %s2165_s21  ;;  %458 = vrot.lane.b32.xlu2 %v2341_v4, %s2166_s22 }
 0x24a   :  { %v391_v5 = vpop.f32.mrf.mxu0  ;;  %v420_v6 = vpop.f32.mrf.mxu1 }
 0x24b   :  { %v392_v10 = vadd.f32 %v391_v5, %v2337_v40  ;;  %v421_v11 = vadd.f32 %v420_v6, %v2347_v7 }
 0x252   :  { %v393_v8 = vpop.f32.mrf.mxu0  ;;  %v422_v9 = vpop.f32.mrf.mxu1 }
 0x253   :  { %v394_v12 = vadd.f32 %v393_v8, %v2337_v40  ;;  %v423_v13 = vadd.f32 %v422_v9, %v2347_v7 }
 0x255   :  { %v2354_v15 = vpack.c.bf16 %v394_v12, %v392_v10  ;;  %v2356_v16 = vpack.c.bf16 %v423_v13, %v421_v11 }
 0x257   :  { %555 = vmatpush.bf16.msra.mxu3 %v2356_v16  ;;  %620 = vrot.lane.b32.xlu2 %v2354_v15, %s2167_s2 }
 0x258   :  { %460 = vrot.lane.b32.xlu1 %v2354_v15, %s2166_s22 }
 0x25b   :  { %556 = vmatpush.bf16.msra.mxu3 %v2364_v18 }
 0x260   :  { %618 = vrot.lane.b32.xlu1 %v2341_v4, %s2167_s2 }
 0x2a1   :  { %v459_v19 = vpop.permute.xlu2 %458 }
 0x2a2   :  { %v470_v24 = vsel %vm462_vm14, %v459_v19, 0 }
 0x2b1   :  { %v621_v23 = vpop.permute.xlu2 %620 }
 0x2b2   :  { %v632_v26 = vsel %vm462_vm14, %v621_v23, 0 }
 0x2b9   :  { %v615_v29 = vpop.permute.xlu0 %614 }
 0x2ca   :  { %v461_v20 = vpop.permute.xlu1 %460 }
 0x2cb   :  { %v473_v21 = vsel %vm462_vm14, %v461_v20, 0 }
 0x2cc   :  { %481 = vmatpush.bf16.xpose.msra.mxu2 %v473_v21 }
 0x2d2   :  { %v619_v27 = vpop.permute.xlu1 %618 }
 0x2d3   :  { %v629_v28 = vsel %vm462_vm14, %v619_v27, 0 }
 0x2d4   :  { %482 = vmatpush.bf16.xpose.msra.mxu2 %v470_v24 }
 0x2db   :  { %1874 = vmatmul.msk.bf16.vlgmr.msra.gmra.mxu2 %vm462_vm14, %v2341_v4 }
 0x2dc   :  { %640 = vmatpush.bf16.xpose.msrb.mxu2 %v632_v26 }
 0x2e4   :  { %641 = vmatpush.bf16.xpose.msrb.mxu2 %v629_v28 }
 0x2eb   :  { %1875 = vmatmul.msk.bf16.gmra.mxu2 %vm462_vm14, %v2354_v15 }
 0x2fb   :  { %1888 = vmatmul.msk.bf16.vlgmr.msrb.gmra.mxu2 %vm462_vm14, %v615_v29 }
 0x35e   :  { %v484_v36 = vpop.f32.mrf.mxu2 }
 0x35f   :  { %v1876_v38 = vadd.f32 -1e+09, %v484_v36 }
 0x361   :  { %v498_v39 = vsel %vm2378_vm15, %v484_v36, %v1876_v38  ;;  %v1827_v36 = vld [vmem:[%s2978_s0 + $0x48] sm:$0xff]  ;;  %v1828_v38 = vld [vmem:[%s2978_s0 + $0x50] sm:$0xff] }
 0x362   :  { %v503_v41 = vsel %vm502_vm1, %v498_v39, -inf }
 0x363   :  { %504 = vmax.xlane.f32.xlu2 %v503_v41  ;;  %v1830_v41 = vld [vmem:[%s2978_s0 + $0x60] sm:$0xff] }
 0x366   :  { %v486_v43 = vpop.f32.mrf.mxu2 }
 0x367   :  { %v1877_v45 = vadd.f32 -1e+09, %v486_v43 }
 0x369   :  { %v499_v46 = vsel %vm2385_vm2, %v486_v43, %v1877_v45  ;;  %v1832_v43 = vld [vmem:[%s2978_s0 + $0x70] sm:$0xff]  ;;  %v2455_v45 = vld [vmem:[%s2982_s3] sm:$0xff] }
 0x36a   :  { %v506_v47 = vsel %vm502_vm1, %v499_v46, -inf  ;;  %597 = vmatpush.bf16.msrb.mxu3 %v2455_v45 }
 0x36b   :  { %507 = vmax.xlane.f32.xlu1 %v506_v47  ;;  %v1833_v47 = vld [vmem:[%s2978_s0 + $0x78] sm:$0xff] }
 0x36e   :  { %v489_v30 = vpop.f32.mrf.mxu2 }
 0x36f   :  { %v1878_v50 = vadd.f32 -1e+09, %v489_v30 }
 0x371   :  { %v500_v51 = vsel %vm2392_vm3, %v489_v30, %v1878_v50 }
 0x372   :  { %v509_v52 = vsel %vm502_vm1, %v500_v51, -inf }
 0x373   :  { %510 = vmax.xlane.f32.xlu1 %v509_v52 }
 0x376   :  { %v491_v54 = vpop.f32.mrf.mxu2 }
 0x377   :  { %v1879_v56 = vadd.f32 -1e+09, %v491_v54 }
 0x379   :  { %v501_v57 = vsel %vm2399_vm4, %v491_v54, %v1879_v56 }
 0x37a   :  { %v512_v58 = vsel %vm502_vm1, %v501_v57, -inf }
 0x37b   :  { %616 = vrot.lane.b32.xlu2 %v2354_v15, %s2165_s21  ;;  %513 = vmax.xlane.f32.xlu1 %v512_v58 }
 0x37e   :  { %v643_v59 = vpop.f32.mrf.mxu2 }
 0x37f   :  { %v1890_v60 = vadd.f32 -1e+09, %v643_v59 }
 0x381   :  { %v2410_v61 = vsel %vm2378_vm15, %v643_v59, %v1890_v60 }
 0x382   :  { %v661_v35 = vsel %vm502_vm1, %v2410_v61, -inf }
 0x383   :  { %662 = vmax.xlane.f32.xlu1 %v661_v35 }
 0x386   :  { %v645_v62 = vpop.f32.mrf.mxu2 }
 0x387   :  { %v1891_v63 = vadd.f32 -1e+09, %v645_v62 }
 0x389   :  { %v2416_v0 = vsel %vm2385_vm2, %v645_v62, %v1891_v63 }
 0x38a   :  { %v664_v1 = vsel %vm502_vm1, %v2416_v0, -inf }
 0x38b   :  { %665 = vmax.xlane.f32.xlu1 %v664_v1 }
 0x3d6   :  { %v505_v2 = vpop.xlane.xlu2 %504 }
 0x3d7   :  { %v515_v3 = vsub.f32 %v498_v39, %v505_v2  ;;  %v1829_v39 = vld [vmem:[%s2978_s0 + $0x58] sm:$0xff] }
 0x3d9   :  { %v519_v5 = vmul.f32 1.442695, %v515_v3 }
 0x3db   :  { %2020 = vpow2.f32 %v519_v5 }
 0x3de   :  { %v508_v6 = vpop.xlane.xlu1 %507  ;;  %v617_v8 = vpop.permute.xlu2 %616 }
 0x3df   :  { %v516_v9 = vsub.f32 %v499_v46, %v508_v6  ;;  %1889 = vmatmul.msk.bf16.gmra.mxu2 %vm462_vm14, %v617_v8 }
 0x3e1   :  { %v2021_v10 = vpop.eup %2020  ;;  %v521_v11 = vmul.f32 1.442695, %v516_v9 }
 0x3e2   :  { %v527_v12 = vsel %vm502_vm1, %v2021_v10, 0.0 }
 0x3e3   :  { %2022 = vpow2.f32 %v521_v11  ;;  %528 = vadd.xlane.f32.xlu1 %v527_v12 }
 0x3e6   :  { %v511_v13 = vpop.xlane.xlu1 %510 }
 0x3e7   :  { %v517_v14 = vsub.f32 %v500_v51, %v511_v13 }
 0x3e9   :  { %v2023_v17 = vpop.eup %2022  ;;  %v523_v19 = vmul.f32 1.442695, %v517_v14 }
 0x3ea   :  { %v530_v20 = vsel %vm502_vm1, %v2023_v17, 0.0  ;;  %v539_v21 = vpack.c.bf16 %v2023_v17, %v2021_v10 }
 0x3eb   :  { %2024 = vpow2.f32 %v523_v19  ;;  %531 = vadd.xlane.f32.xlu2 %v530_v20 }
 0x3ec   :  { %1880 = vmatmul.msk.bf16.vlgmr.msra.gmra.mxu3 %vm502_vm1, %v539_v21 }
 0x3ee   :  { %v514_v23 = vpop.xlane.xlu1 %513 }
 0x3ef   :  { %v518_v24 = vsub.f32 %v501_v57, %v514_v23 }
 0x3f1   :  { %v2025_v26 = vpop.eup %2024  ;;  %v525_v27 = vmul.f32 1.442695, %v518_v24 }
 0x3f2   :  { %v533_v28 = vsel %vm502_vm1, %v2025_v26, 0.0 }
 0x3f3   :  { %2026 = vpow2.f32 %v525_v27  ;;  %534 = vadd.xlane.f32.xlu1 %v533_v28 }
 0x3f6   :  { %v663_v46 = vpop.xlane.xlu1 %662 }
 0x3f7   :  { %v673_v21 = vsub.f32 %v2410_v61, %v663_v46 }
 0x3f9   :  { %v2027_v29 = vpop.eup %2026  ;;  %v677_v24 = vmul.f32 1.442695, %v673_v21 }
 0x3fa   :  { %v536_v31 = vsel %vm502_vm1, %v2027_v29, 0.0  ;;  %v540_v33 = vpack.c.bf16 %v2027_v29, %v2025_v26 }
 0x3fb   :  { %537 = vadd.xlane.f32.xlu1 %v536_v31 }
 0x3fc   :  { %1881 = vmatmul.msk.bf16.gmra.mxu3 %vm502_vm1, %v540_v33 }
 0x3fe   :  { %v666_v50 = vpop.xlane.xlu1 %665 }
 0x3ff   :  { %v674_v17 = vsub.f32 %v2416_v0, %v666_v50 }
 0x401   :  { %v679_v23 = vmul.f32 1.442695, %v674_v17 }
 0x403   :  { %701 = vrot.lane.b32.xlu2 %v2364_v18, %s2165_s21 }
 0x414   :  { %703 = vrot.lane.b32.xlu1 %v2356_v16, %s2165_s21 }
 0x429   :  { %73 = vxpose.xlu2.b32.start [1/8] (short) (narrow) %v1826_v34, 32 }
 0x431   :  { %74 = vxpose.xlu2.b32.cont [2/8] (short) (narrow) %v1827_v36, 32 }
 0x439   :  { %75 = vxpose.xlu2.b32.cont [3/8] (short) (narrow) %v1828_v38, 32 }
 0x441   :  { %76 = vxpose.xlu2.b32.cont [4/8] (short) (narrow) %v1829_v39, 32 }
 0x449   :  { %77 = vxpose.xlu2.b32.cont [5/8] (short) (narrow) %v1830_v41, 32 }
 0x451   :  { %78 = vxpose.xlu2.b32.cont [6/8] (short) (narrow) %v1831_v42, 32 }
 0x456   :  { %v529_v56 = vpop.xlane.xlu1 %528 }
 0x457   :  { %2028 = vrcp.f32 %v529_v56 }
 0x459   :  { %79 = vxpose.xlu2.b32.cont [7/8] (short) (narrow) %v1832_v43, 32 }
 0x45d   :  { %v2029_v62 = vpop.eup %2028 }
 0x45e   :  { %v532_v58 = vpop.xlane.xlu2 %531 }
 0x45f   :  { %2030 = vrcp.f32 %v532_v58 }
 0x461   :  { %80 = vxpose.xlu2.b32.end [8/8] (short) (narrow) %v1833_v47, 32 }
 0x462   :  { %v648_v48 = vpop.f32.mrf.mxu2 }
 0x463   :  { %v1892_v30 = vadd.f32 -1e+09, %v648_v48 }
 0x465   :  { %v659_v51 = vsel %vm2392_vm3, %v648_v48, %v1892_v30  ;;  %v2031_v63 = vpop.eup %2030 }
 0x466   :  { %v667_v52 = vsel %vm502_vm1, %v659_v51, -inf  ;;  %v535_v35 = vpop.xlane.xlu1 %534  ;;  %v702_v19 = vpop.permute.xlu2 %701 }
 0x467   :  { %668 = vmax.xlane.f32.xlu0 %v667_v52  ;;  %2032 = vrcp.f32 %v535_v35  ;;  %v2491_v52 = vld [vmem:[%s2982_s3 + $0x8] sm:$0xff] }
 0x468   :  { %761 = vmatpush.bf16.msrb.mxu0 %v2491_v52 }
 0x46a   :  { %v650_v53 = vpop.f32.mrf.mxu2 }
 0x46b   :  { %v1893_v54 = vadd.f32 -1e+09, %v650_v53 }
 0x46d   :  { %v660_v57 = vsel %vm2399_vm4, %v650_v53, %v1893_v54  ;;  %v2033_v9 = vpop.eup %2032 }
 0x46e   :  { %v670_v59 = vsel %vm502_vm1, %v660_v57, -inf  ;;  %v538_v6 = vpop.xlane.xlu1 %537 }
 0x46f   :  { %v558_v60 = vpop.f32.mrf.mxu3  ;;  %671 = vmax.xlane.f32.xlu1 %v670_v59  ;;  %2034 = vrcp.f32 %v538_v6 }
 0x470   :  { %v572_v2 = vmul.f32 %v2029_v62, %v558_v60  ;;  %2036 = vpow2.f32 %v679_v23 }
 0x471   :  { %2038 = vpow2.f32 %v677_v24 }
 0x475   :  { %v2035_v11 = vpop.eup %2034 }
 0x476   :  { %v2471_v26 = vpop.eup %2036 }
 0x477   :  { %v560_v1 = vpop.f32.mrf.mxu3  ;;  %v2473_v27 = vpop.eup %2038  ;;  %v688_v17 = vsel %vm502_vm1, %v2471_v26, 0.0 }
 0x478   :  { %v573_v3 = vmul.f32 %v2031_v63, %v560_v1  ;;  %v697_v28 = vpack.c.bf16 %v2471_v26, %v2473_v27 }
 0x47a   :  { %v576_v5 = vpack.c.bf16 %v573_v3, %v572_v2 }
 0x47c   :  { %1886 = vmatmul.msk.bf16.vlgmr.msrb.gmra.mxu3 %vm462_vm14, %v576_v5 }
 0x47f   :  { %v563_v8 = vpop.f32.mrf.mxu3 }
 0x480   :  { %v574_v13 = vmul.f32 %v2033_v9, %v563_v8 }
 0x486   :  { %v704_v10 = vpop.permute.xlu1 %703 }
 0x487   :  { %v565_v12 = vpop.f32.mrf.mxu3  ;;  %719 = vmatpush.bf16.msra.mxu3 %v704_v10 }
 0x488   :  { %v575_v14 = vmul.f32 %v2035_v11, %v565_v12 }
 0x48a   :  { %v577_v20 = vpack.c.bf16 %v575_v14, %v574_v13  ;;  %v685_v14 = vsel %vm502_vm1, %v2473_v27, 0.0 }
 0x48b   :  { %720 = vmatpush.bf16.msra.mxu3 %v702_v19 }
 0x48c   :  { %1887 = vmatmul.msk.bf16.gmra.mxu3 %vm462_vm14, %v577_v20 }
 0x49c   :  { %1894 = vmatmul.msk.bf16.vlgmr.msra.gmra.mxu3 %vm502_vm1, %v697_v28 }
 0x4c2   :  { %v89_v0 = vpop.trf.xlu2 }
 0x4c3   :  { %v118_v29 = vsel %vm105_vm0, %v89_v0, 0.0 }
 0x4c4   :  { %119 = vadd.xlane.f32.xlu0 %v118_v29 }
 0x4ca   :  { %944 = vrot.lane.b32.xlu2 %v2354_v15, %s2168_s1  ;;  %v90_v61 = vpop.trf.xlu2 }
 0x4cb   :  { %v121_v31 = vsel %vm105_vm0, %v90_v61, 0.0 }
 0x4cc   :  { %122 = vadd.xlane.f32.xlu0 %v121_v31 }
 0x4d2   :  { %v91_v33 = vpop.trf.xlu2 }
 0x4d3   :  { %v124_v34 = vsel %vm105_vm0, %v91_v33, 0.0 }
 0x4d4   :  { %125 = vadd.xlane.f32.xlu1 %v124_v34 }
 0x4da   :  { %v92_v36 = vpop.trf.xlu2  ;;  %v669_v38 = vpop.xlane.xlu0 %668 }
 0x4db   :  { %v127_v39 = vsel %vm105_vm0, %v92_v36, 0.0  ;;  %v675_v41 = vsub.f32 %v659_v51, %v669_v38 }
 0x4dc   :  { %128 = vadd.xlane.f32.xlu0 %v127_v39 }
 0x4dd   :  { %v681_v42 = vmul.f32 1.442695, %v675_v41 }
 0x4df   :  { %2040 = vpow2.f32 %v681_v42 }
 0x4e2   :  { %v672_v43 = vpop.xlane.xlu1 %671 }
 0x4e3   :  { %v676_v46 = vsub.f32 %v660_v57, %v672_v43 }
 0x4e5   :  { %v683_v47 = vmul.f32 1.442695, %v676_v46  ;;  %v2484_v48 = vpop.eup %2040 }
 0x4e7   :  { %2042 = vpow2.f32 %v683_v47 }
 0x4ed   :  { %v2043_v30 = vpop.eup %2042 }
 0x4ee   :  { %v698_v50 = vpack.c.bf16 %v2043_v30, %v2484_v48  ;;  %v694_v19 = vsel %vm502_vm1, %v2043_v30, 0.0 }
 0x4f0   :  { %1895 = vmatmul.msk.bf16.gmra.mxu3 %vm502_vm1, %v698_v50 }
 0x524   :  { %v945_v51 = vpop.permute.xlu2 %944 }
 0x525   :  { %v956_v53 = vsel %vm462_vm14, %v945_v51, 0 }
 0x526   :  { %964 = vmatpush.bf16.xpose.msra.mxu0 %v956_v53 }
 0x537   :  { %v120_v54 = vpop.xlane.xlu0 %119 }
 0x538   :  { %v141_v56 = vmul.f32 %v2230_v22, %v120_v54 }
 0x53a   :  { %v2496_v57 = vsub.f32 %v89_v0, %v141_v56 }
 0x53c   :  { %v157_v58 = vmul.f32 %v2496_v57, %v2496_v57 }
 0x53e   :  { %v173_v59 = vsel %vm105_vm0, %v157_v58, 0.0 }
 0x53f   :  { %v123_v60 = vpop.xlane.xlu0 %122  ;;  %174 = vadd.xlane.f32.xlu1 %v173_v59 }
 0x540   :  { %v142_v35 = vmul.f32 %v2230_v22, %v123_v60 }
 0x542   :  { %v2502_v62 = vsub.f32 %v90_v61, %v142_v35 }
 0x544   :  { %v158_v63 = vmul.f32 %v2502_v62, %v2502_v62 }
 0x546   :  { %v176_v1 = vsel %vm105_vm0, %v158_v63, 0.0 }
 0x547   :  { %v126_v2 = vpop.xlane.xlu1 %125  ;;  %177 = vadd.xlane.f32.xlu0 %v176_v1 }
 0x548   :  { %v143_v3 = vmul.f32 %v2230_v22, %v126_v2  ;;  %v691_v2 = vsel %vm502_vm1, %v2484_v48, 0.0 }
 0x54a   :  { %v2508_v5 = vsub.f32 %v91_v33, %v143_v3 }
 0x54c   :  { %v159_v6 = vmul.f32 %v2508_v5, %v2508_v5 }
 0x54e   :  { %v179_v8 = vsel %vm105_vm0, %v159_v6, 0.0 }
 0x54f   :  { %180 = vadd.xlane.f32.xlu1 %v179_v8  ;;  %v129_v9 = vpop.xlane.xlu0 %128 }
 0x550   :  { %v144_v10 = vmul.f32 %v2230_v22, %v129_v9 }
 0x552   :  { %v2514_v11 = vsub.f32 %v92_v36, %v144_v10 }
 0x554   :  { %v160_v12 = vmul.f32 %v2514_v11, %v2514_v11 }
 0x556   :  { %v182_v13 = vsel %vm105_vm0, %v160_v12, 0.0 }
 0x557   :  { %183 = vadd.xlane.f32.xlu0 %v182_v13 }
 0x568   :  { %783 = vrot.lane.b32.xlu1 %v2354_v15, %s2169_s18 }
 0x56b   :  { %781 = vrot.lane.b32.xlu0 %v2341_v4, %s2169_s18 }
 0x573   :  { %777 = vrot.lane.b32.xlu0 %v2341_v4, %s2170_s19 }
 0x592   :  { %686 = vadd.xlane.f32.xlu1 %v685_v14 }
 0x59d   :  { %689 = vadd.xlane.f32.xlu0 %v688_v17 }
 0x5a5   :  { %695 = vadd.xlane.f32.xlu0 %v694_v19 }
 0x5ab   :  { %942 = vrot.lane.b32.xlu1 %v2341_v4, %s2168_s1 }
 0x5b2   :  { %v175_v20 = vpop.xlane.xlu1 %174 }
 0x5b3   :  { %v189_v21 = vmul.f32 %v175_v20, %v2230_v22 }
 0x5b5   :  { %v197_v23 = vadd.f32 1e-05, %v189_v21 }
 0x5b7   :  { %2044 = vrsqrt.f32 %v197_v23  ;;  %vm247_vm6 = vweird.f32 %v197_v23 }
 0x5b9   :  { %938 = vrot.lane.b32.xlu0 %v2341_v4, %s2171_s20 }
 0x5ba   :  { %v178_v24 = vpop.xlane.xlu0 %177 }
 0x5bb   :  { %v190_v27 = vmul.f32 %v178_v24, %v2230_v22 }
 0x5bd   :  { %v2045_v26 = vpop.eup %2044  ;;  %v198_v28 = vadd.f32 1e-05, %v190_v27 }
 0x5be   :  { %v242_v0 = vmul.f32 %v2045_v26, %v197_v23  ;;  %vm248_vm5 = vweird.f32 %v2045_v26 }
 0x5bf   :  { %2046 = vrsqrt.f32 %v198_v28  ;;  %vm249_vm7 = vmor %vm247_vm6, %vm248_vm5  ;;  %vm257_vm9 = vweird.f32 %v198_v28 }
 0x5c0   :  { %v243_v29 = vmul.f32 %v2045_v26, %v242_v0  ;;  %v2556_v0 = vpop.f32.mrf.mxu3 }
 0x5c1   :  { %940 = vrot.lane.b32.xlu0 %v2354_v15, %s2171_s20 }
 0x5c2   :  { %v244_v61 = vmul.f32 0.5, %v243_v29  ;;  %v181_v31 = vpop.xlane.xlu1 %180 }
 0x5c3   :  { %v191_v33 = vmul.f32 %v181_v31, %v2230_v22 }
 0x5c4   :  { %v245_v34 = vsub.f32 1.5, %v244_v61 }
 0x5c5   :  { %v2047_v36 = vpop.eup %2046  ;;  %v199_v38 = vadd.f32 1e-05, %v191_v33 }
 0x5c6   :  { %v246_v39 = vmul.f32 %v2045_v26, %v245_v34  ;;  %v252_v4 = vmul.f32 %v2047_v36, %v198_v28  ;;  %vm258_vm8 = vweird.f32 %v2047_v36 }
 0x5c7   :  { %2048 = vrsqrt.f32 %v199_v38  ;;  %vm259_vm10 = vmor %vm257_vm9, %vm258_vm8  ;;  %vm267_vm12 = vweird.f32 %v199_v38 }
 0x5c8   :  { %v253_v41 = vmul.f32 %v2047_v36, %v252_v4  ;;  %v250_v42 = vsel %vm249_vm7, %v2045_v26, %v246_v39 }
 0x5c9   :  { %v285_v51 = vmul.f32 %v250_v42, %v2496_v57 }
 0x5ca   :  { %v254_v43 = vmul.f32 0.5, %v253_v41  ;;  %v184_v46 = vpop.xlane.xlu0 %183 }
 0x5cb   :  { %v192_v47 = vmul.f32 %v184_v46, %v2230_v22  ;;  %v294_v35 = vmul.f32 %v2312_v32, %v285_v51 }
 0x5cc   :  { %v255_v30 = vsub.f32 1.5, %v254_v43 }
 0x5cd   :  { %v2049_v50 = vpop.eup %2048  ;;  %v200_v53 = vadd.f32 1e-05, %v192_v47  ;;  %v303_v3 = vadd.f32 %v2319_v25, %v294_v35 }
 0x5ce   :  { %v256_v54 = vmul.f32 %v2047_v36, %v255_v30  ;;  %v262_v56 = vmul.f32 %v2049_v50, %v199_v38  ;;  %vm268_vm11 = vweird.f32 %v2049_v50 }
 0x5cf   :  { %2050 = vrsqrt.f32 %v200_v53  ;;  %vm269_vm13 = vmor %vm267_vm12, %vm268_vm11  ;;  %vm277_vm6 = vweird.f32 %v200_v53 }
 0x5d0   :  { %v260_v58 = vsel %vm259_vm10, %v2047_v36, %v256_v54  ;;  %v263_v59 = vmul.f32 %v2049_v50, %v262_v56 }
 0x5d1   :  { %v286_v60 = vmul.f32 %v260_v58, %v2502_v62 }
 0x5d2   :  { %v264_v63 = vmul.f32 0.5, %v263_v59 }
 0x5d3   :  { %v295_v22 = vmul.f32 %v2312_v32, %v286_v60 }
 0x5d4   :  { %v265_v1 = vsub.f32 1.5, %v264_v63 }
 0x5d5   :  { %v2051_v57 = vpop.eup %2050  ;;  %692 = vadd.xlane.f32.xlu1 %v691_v2  ;;  %v304_v6 = vadd.f32 %v2319_v25, %v295_v22 }
 0x5d6   :  { %v266_v8 = vmul.f32 %v2049_v50, %v265_v1  ;;  %v272_v9 = vmul.f32 %v2051_v57, %v200_v53  ;;  %vm278_vm5 = vweird.f32 %v2051_v57 }
 0x5d7   :  { %v309_v10 = vpack.c.bf16 %v304_v6, %v303_v3  ;;  %vm279_vm7 = vmor %vm277_vm6, %vm278_vm5 }
 0x5d8   :  { %v273_v62 = vmul.f32 %v2051_v57, %v272_v9  ;;  %v270_v12 = vsel %vm269_vm13, %v2049_v50, %v266_v8 }
 0x5d9   :  { %1868 = vmatmul.msk.bf16.gmra.mxu0 %vm105_vm0, %v309_v10  ;;  %1872 = vmatmul.msk.bf16.gmra.mxu1 %vm105_vm0, %v309_v10  ;;  %v287_v19 = vmul.f32 %v270_v12, %v2508_v5 }
 0x5da   :  { %v274_v13 = vmul.f32 0.5, %v273_v62  ;;  %v784_v48 = vpop.permute.xlu1 %783 }
 0x5db   :  { %v795_v14 = vsel %vm462_vm14, %v784_v48, 0  ;;  %v296_v27 = vmul.f32 %v2312_v32, %v287_v19 }
 0x5dc   :  { %v275_v17 = vsub.f32 1.5, %v274_v13  ;;  %803 = vmatpush.bf16.xpose.msrb.mxu1 %v795_v14 }
 0x5dd   :  { %v782_v23 = vpop.permute.xlu0 %781  ;;  %v305_v29 = vadd.f32 %v2319_v25, %v296_v27 }
 0x5de   :  { %v276_v20 = vmul.f32 %v2051_v57, %v275_v17  ;;  %v792_v26 = vsel %vm462_vm14, %v782_v23, 0 }
 0x5e0   :  { %v280_v21 = vsel %vm279_vm7, %v2051_v57, %v276_v20 }
 0x5e1   :  { %v288_v24 = vmul.f32 %v280_v21, %v2514_v11  ;;  %v2564_v11 = vpop.f32.mrf.mxu3 }
 0x5e3   :  { %v297_v28 = vmul.f32 %v2312_v32, %v288_v24 }
 0x5e4   :  { %804 = vmatpush.bf16.xpose.msrb.mxu1 %v792_v26 }
 0x5e5   :  { %v306_v5 = vadd.f32 %v2319_v25, %v297_v28  ;;  %v778_v31 = vpop.permute.xlu0 %777 }
 0x5e7   :  { %v310_v61 = vpack.c.bf16 %v306_v5, %v305_v29 }
 0x5e9   :  { %1869 = vmatmul.msk.bf16.gmra.mxu0 %vm105_vm0, %v310_v61  ;;  %1873 = vmatmul.msk.bf16.gmra.mxu1 %vm105_vm0, %v310_v61  ;;  %v2566_v33 = vpop.f32.mrf.mxu3 }
 0x5ee   :  { %779 = vrot.lane.b32.xlu1 %v2354_v15, %s2170_s19 }
 0x5f1   :  { %v2569_v32 = vpop.f32.mrf.mxu3 }
 0x5f9   :  { %1902 = vmatmul.msk.bf16.vlgmr.msrb.gmra.mxu1 %vm462_vm14, %v778_v31  ;;  %v722_v36 = vpop.f32.mrf.mxu3  ;;  %v2605_v31 = vld [vmem:[%s2979_s4 + $0x2] ss:$0 sm:$0xff] }
 0x601   :  { %v724_v4 = vpop.f32.mrf.mxu3 }
 0x605   :  { %v687_v34 = vpop.xlane.xlu1 %686 }
 0x606   :  { %2052 = vrcp.f32 %v687_v34 }
 0x609   :  { %v727_v30 = vpop.f32.mrf.mxu3 }
 0x60c   :  { %v2053_v38 = vpop.eup %2052 }
 0x60d   :  { %v736_v41 = vmul.f32 %v2053_v38, %v722_v36 }
 0x610   :  { %v690_v25 = vpop.xlane.xlu0 %689 }
 0x611   :  { %2054 = vrcp.f32 %v690_v25  ;;  %v729_v54 = vpop.f32.mrf.mxu3  ;;  %v611_v25 = vadd.f32 %v2605_v31, %v2564_v11 }
 0x617   :  { %v2055_v39 = vpop.eup %2054 }
 0x618   :  { %v737_v42 = vmul.f32 %v2055_v39, %v724_v4  ;;  %v696_v47 = vpop.xlane.xlu0 %695  ;;  %v612_v4 = vadd.f32 %v2605_v31, %v2566_v33 }
 0x619   :  { %2056 = vrcp.f32 %v696_v47 }
 0x61a   :  { %v740_v15 = vpack.c.bf16 %v737_v42, %v736_v41 }
 0x61c   :  { %1900 = vmatmul.msk.bf16.vlgmr.msrb.gmra.mxu0 %vm462_vm14, %v740_v15 }
 0x61d   :  { %v943_v43 = vpop.permute.xlu1 %942 }
 0x61e   :  { %v953_v46 = vsel %vm462_vm14, %v943_v43, 0 }
 0x61f   :  { %965 = vmatpush.bf16.xpose.msra.mxu0 %v953_v46  ;;  %v2057_v51 = vpop.eup %2056 }
 0x620   :  { %v739_v58 = vmul.f32 %v2057_v51, %v729_v54 }
 0x62b   :  { %v939_v6 = vpop.permute.xlu0 %938 }
 0x633   :  { %v941_v21 = vpop.permute.xlu0 %940 }
 0x648   :  { %v693_v50 = vpop.xlane.xlu1 %692 }
 0x649   :  { %2058 = vrcp.f32 %v693_v50 }
 0x64f   :  { %v2059_v53 = vpop.eup %2058 }
 0x650   :  { %v738_v56 = vmul.f32 %v2059_v53, %v727_v30 }
 0x652   :  { %v741_v59 = vpack.c.bf16 %v739_v58, %v738_v56 }
 0x654   :  { %1901 = vmatmul.msk.bf16.gmra.mxu0 %vm462_vm14, %v741_v59 }
 0x656   :  { %v396_v60 = vpop.f32.mrf.mxu0  ;;  %v425_v35 = vpop.f32.mrf.mxu1 }
 0x657   :  { %v397_v1 = vadd.f32 %v396_v60, %v2337_v40  ;;  %v426_v23 = vadd.f32 %v425_v35, %v2347_v7 }
 0x65e   :  { %v398_v63 = vpop.f32.mrf.mxu0  ;;  %v427_v22 = vpop.f32.mrf.mxu1 }
 0x65f   :  { %v399_v2 = vadd.f32 %v398_v63, %v2337_v40  ;;  %v428_v17 = vadd.f32 %v427_v22, %v2347_v7 }
 0x660   :  { %v780_v57 = vpop.permute.xlu1 %779 }
 0x661   :  { %v2576_v3 = vpack.c.bf16 %v399_v2, %v397_v1  ;;  %1903 = vmatmul.msk.bf16.gmra.mxu1 %vm462_vm14, %v780_v57  ;;  %v2592_v24 = vpack.c.bf16 %v428_v17, %v426_v23 }
 0x664   :  { %1916 = vmatmul.msk.bf16.vlgmr.msra.gmra.mxu0 %vm462_vm14, %v939_v6 }
 0x666   :  { %v401_v8 = vpop.f32.mrf.mxu0  ;;  %v430_v9 = vpop.f32.mrf.mxu1 }
 0x667   :  { %v402_v12 = vadd.f32 %v401_v8, %v2337_v40  ;;  %v431_v13 = vadd.f32 %v430_v9, %v2347_v7 }
 0x66e   :  { %v403_v10 = vpop.f32.mrf.mxu0  ;;  %v432_v62 = vpop.f32.mrf.mxu1 }
 0x66f   :  { %v404_v48 = vadd.f32 %v403_v10, %v2337_v40  ;;  %v433_v14 = vadd.f32 %v432_v62, %v2347_v7 }
 0x671   :  { %v2585_v19 = vpack.c.bf16 %v404_v48, %v402_v12  ;;  %v2587_v20 = vpack.c.bf16 %v433_v14, %v431_v13 }
 0x673   :  { %1246 = vmatpush.bf16.msrb.mxu0 %v2587_v20 }
 0x674   :  { %1917 = vmatmul.msk.bf16.gmra.mxu0 %vm462_vm14, %v941_v21 }
 0x676   :  { %v806_v27 = vpop.f32.mrf.mxu1 }
 0x677   :  { %v1904_v26 = vadd.f32 -1e+09, %v806_v27  ;;  %1247 = vmatpush.bf16.msrb.mxu0 %v2592_v24 }
 0x679   :  { %v820_v40 = vsel %vm2378_vm15, %v806_v27, %v1904_v26 }
 0x67a   :  { %v824_v28 = vsel %vm502_vm1, %v820_v40, -inf }
 0x67b   :  { %1439 = vmatpush.bf16.msra.mxu0 %v2491_v52  ;;  %825 = vmax.xlane.f32.xlu1 %v824_v28  ;;  %v610_v52 = vadd.f32 %v2605_v31, %v2556_v0  ;;  %v613_v0 = vadd.f32 %v2605_v31, %v2569_v32 }
 0x67e   :  { %v808_v29 = vpop.f32.mrf.mxu1 }
 0x67f   :  { %v1905_v7 = vadd.f32 -1e+09, %v808_v29 }
 0x681   :  { %v821_v5 = vsel %vm2385_vm2, %v808_v29, %v1905_v7 }
 0x682   :  { %v827_v61 = vsel %vm502_vm1, %v821_v5, -inf }
 0x683   :  { %828 = vmax.xlane.f32.xlu0 %v827_v61 }
 0x694   :  { %864 = vrot.lane.b32.xlu1 %v2356_v16, %s2170_s19 }
 0x697   :  { %862 = vrot.lane.b32.xlu0 %v2364_v18, %s2170_s19 }
 0x699   :  { %v763_v34 = vpop.f32.mrf.mxu0 }
 0x69a   :  { %v2613_v36 = vadd.f32 %v763_v34, %v610_v52 }
 0x69c   :  { %1025 = vrot.lane.b32.xlu1 %v2356_v16, %s2171_s20 }
 0x6a1   :  { %v765_v38 = vpop.f32.mrf.mxu0 }
 0x6a2   :  { %v2619_v39 = vadd.f32 %v765_v38, %v611_v25 }
 0x6d1   :  { %v768_v41 = vpop.f32.mrf.mxu0 }
 0x6d2   :  { %v2623_v42 = vadd.f32 %v768_v41, %v612_v4 }
 0x6d9   :  { %v770_v15 = vpop.f32.mrf.mxu0 }
 0x6da   :  { %v2627_v43 = vadd.f32 %v770_v15, %v613_v0 }
 0x6de   :  { %v811_v46 = vpop.f32.mrf.mxu1 }
 0x6df   :  { %v1906_v16 = vadd.f32 -1e+09, %v811_v46 }
 0x6e1   :  { %v967_v47 = vpop.f32.mrf.mxu0  ;;  %v822_v11 = vsel %vm2392_vm3, %v811_v46, %v1906_v16 }
 0x6e2   :  { %v1918_v30 = vadd.f32 -1e+09, %v967_v47  ;;  %v830_v50 = vsel %vm502_vm1, %v822_v11, -inf }
 0x6e3   :  { %831 = vmax.xlane.f32.xlu1 %v830_v50 }
 0x6e4   :  { %v2634_v33 = vsel %vm2378_vm15, %v967_v47, %v1918_v30 }
 0x6e5   :  { %v985_v32 = vsel %vm502_vm1, %v2634_v33, -inf }
 0x6e6   :  { %v813_v51 = vpop.f32.mrf.mxu1  ;;  %986 = vmax.xlane.f32.xlu0 %v985_v32 }
 0x6e7   :  { %v1907_v53 = vadd.f32 -1e+09, %v813_v51 }
 0x6e9   :  { %v969_v54 = vpop.f32.mrf.mxu0  ;;  %v823_v56 = vsel %vm2399_vm4, %v813_v51, %v1907_v53 }
 0x6ea   :  { %v1919_v58 = vadd.f32 -1e+09, %v969_v54  ;;  %v833_v59 = vsel %vm502_vm1, %v823_v56, -inf }
 0x6eb   :  { %834 = vmax.xlane.f32.xlu2 %v833_v59 }
 0x6ec   :  { %v982_v60 = vsel %vm2385_vm2, %v969_v54, %v1919_v58 }
 0x6ed   :  { %v988_v35 = vsel %vm502_vm1, %v982_v60, -inf }
 0x6ee   :  { %v826_v63 = vpop.xlane.xlu1 %825  ;;  %989 = vmax.xlane.f32.xlu0 %v988_v35 }
 0x6ef   :  { %v836_v22 = vsub.f32 %v820_v40, %v826_v63 }
 0x6f1   :  { %v840_v1 = vmul.f32 1.442695, %v836_v22  ;;  %v972_v2 = vpop.f32.mrf.mxu0 }
 0x6f2   :  { %v1920_v40 = vadd.f32 -1e+09, %v972_v2 }
 0x6f3   :  { %2060 = vpow2.f32 %v840_v1 }
 0x6f4   :  { %v2654_v28 = vsel %vm2392_vm3, %v972_v2, %v1920_v40 }
 0x6f6   :  { %v829_v57 = vpop.xlane.xlu0 %828 }
 0x6f7   :  { %v837_v6 = vsub.f32 %v821_v5, %v829_v57 }
 0x6f9   :  { %v2061_v8 = vpop.eup %2060  ;;  %v842_v9 = vmul.f32 1.442695, %v837_v6  ;;  %v974_v10 = vpop.f32.mrf.mxu0 }
 0x6fa   :  { %v1921_v62 = vadd.f32 -1e+09, %v974_v10  ;;  %v848_v12 = vsel %vm502_vm1, %v2061_v8, 0.0 }
 0x6fb   :  { %849 = vadd.xlane.f32.xlu2 %v848_v12  ;;  %2062 = vpow2.f32 %v842_v9 }
 0x6fc   :  { %v984_v13 = vsel %vm2399_vm4, %v974_v10, %v1921_v62 }
 0x6fd   :  { %v994_v48 = vsel %vm502_vm1, %v984_v13, -inf }
 0x6fe   :  { %995 = vmax.xlane.f32.xlu1 %v994_v48 }
 0x701   :  { %v2063_v14 = vpop.eup %2062 }
 0x702   :  { %1023 = vrot.lane.b32.xlu0 %v2364_v18, %s2171_s20  ;;  %v851_v17 = vsel %vm502_vm1, %v2063_v14, 0.0  ;;  %v860_v27 = vpack.c.bf16 %v2063_v14, %v2061_v8  ;;  %v991_v18 = vsel %vm502_vm1, %v2654_v28, -inf }
 0x706   :  { %v865_v21 = vpop.permute.xlu1 %864  ;;  %852 = vadd.xlane.f32.xlu1 %v851_v17 }
 0x707   :  { %880 = vmatpush.bf16.msra.mxu2 %v865_v21 }
 0x709   :  { %v863_v23 = vpop.permute.xlu0 %862 }
 0x70b   :  { %881 = vmatpush.bf16.msra.mxu2 %v863_v23 }
 0x70e   :  { %v1026_v26 = vpop.permute.xlu1 %1025  ;;  %1908 = vmatmul.msk.bf16.vlgmr.msra.gmra.mxu2 %vm502_vm1, %v860_v27 }
 0x70f   :  { %1041 = vmatpush.bf16.msra.mxu1 %v1026_v26 }
 0x72c   :  { %992 = vmax.xlane.f32.xlu0 %v991_v18 }
 0x740   :  { %1304 = vrot.lane.b32.xlu0 %v2585_v19, %s2167_s2 }
 0x756   :  { %v832_v29 = vpop.xlane.xlu1 %831 }
 0x757   :  { %v838_v7 = vsub.f32 %v822_v11, %v832_v29 }
 0x759   :  { %v844_v5 = vmul.f32 1.442695, %v838_v7  ;;  %v987_v61 = vpop.xlane.xlu0 %986 }
 0x75a   :  { %v997_v38 = vsub.f32 %v2634_v33, %v987_v61 }
 0x75b   :  { %2064 = vpow2.f32 %v844_v5 }
 0x75c   :  { %v1001_v16 = vmul.f32 1.442695, %v997_v38 }
 0x75e   :  { %v835_v52 = vpop.xlane.xlu2 %834 }
 0x75f   :  { %v839_v34 = vsub.f32 %v823_v56, %v835_v52 }
 0x761   :  { %v2065_v25 = vpop.eup %2064  ;;  %v846_v4 = vmul.f32 1.442695, %v839_v34  ;;  %v990_v41 = vpop.xlane.xlu0 %989 }
 0x762   :  { %v998_v0 = vsub.f32 %v982_v60, %v990_v41  ;;  %v854_v15 = vsel %vm502_vm1, %v2065_v25, 0.0  ;;  %v2671_v60 = vld [vmem:[%s2982_s3 + $0x10] sm:$0xff] }
 0x763   :  { %2066 = vpow2.f32 %v846_v4  ;;  %855 = vadd.xlane.f32.xlu1 %v854_v15  ;;  %922 = vmatpush.bf16.msrb.mxu3 %v2671_v60 }
 0x764   :  { %v1003_v46 = vmul.f32 1.442695, %v998_v0 }
 0x766   :  { %2068 = vpow2.f32 %v1003_v46 }
 0x767   :  { %2070 = vpow2.f32 %v1001_v16 }
 0x769   :  { %v2067_v47 = vpop.eup %2066 }
 0x76a   :  { %v857_v11 = vsel %vm502_vm1, %v2067_v47, 0.0  ;;  %v861_v30 = vpack.c.bf16 %v2067_v47, %v2065_v25 }
 0x76b   :  { %858 = vadd.xlane.f32.xlu2 %v857_v11 }
 0x76c   :  { %v2069_v50 = vpop.eup %2068  ;;  %1909 = vmatmul.msk.bf16.gmra.mxu2 %vm502_vm1, %v861_v30 }
 0x76d   :  { %v1012_v33 = vsel %vm502_vm1, %v2069_v50, 0.0  ;;  %v2071_v32 = vpop.eup %2070 }
 0x76e   :  { %1013 = vadd.xlane.f32.xlu0 %v1012_v33  ;;  %v1009_v54 = vsel %vm502_vm1, %v2071_v32, 0.0  ;;  %v1021_v59 = vpack.c.bf16 %v2069_v50, %v2071_v32  ;;  %v850_v22 = vpop.xlane.xlu2 %849 }
 0x771   :  { %v996_v51 = vpop.xlane.xlu1 %995 }
 0x772   :  { %v1000_v53 = vsub.f32 %v984_v13, %v996_v51 }
 0x773   :  { %1010 = vadd.xlane.f32.xlu2 %v1009_v54 }
 0x774   :  { %v1007_v56 = vmul.f32 1.442695, %v1000_v53  ;;  %v1024_v58 = vpop.permute.xlu0 %1023 }
 0x775   :  { %1042 = vmatpush.bf16.msra.mxu1 %v1024_v58 }
 0x776   :  { %2072 = vpow2.f32 %v1007_v56 }
 0x777   :  { %2074 = vrcp.f32 %v850_v22 }
 0x778   :  { %1922 = vmatmul.msk.bf16.vlgmr.msra.gmra.mxu1 %vm502_vm1, %v1021_v59 }
 0x779   :  { %1282 = vmatpush.bf16.msrb.mxu1 %v2455_v45  ;;  %v853_v1 = vpop.xlane.xlu1 %852  ;;  %v2680_v45 = vld [vmem:[%s2982_s3 + $0x18] sm:$0xff] }
 0x77a   :  { %2076 = vrcp.f32 %v853_v1  ;;  %1083 = vmatpush.bf16.msrb.mxu2 %v2680_v45 }
 0x77c   :  { %v2073_v35 = vpop.eup %2072 }
 0x77d   :  { %v1018_v63 = vsel %vm502_vm1, %v2073_v35, 0.0  ;;  %v2075_v57 = vpop.eup %2074 }
 0x77e   :  { %1019 = vadd.xlane.f32.xlu1 %v1018_v63 }
 0x780   :  { %v2077_v6 = vpop.eup %2076 }
 0x78b   :  { %1153 = vrot.lane.b32.xlu2 %v2585_v19, %s2166_s22 }
 0x791   :  { %v883_v2 = vpop.f32.mrf.mxu2 }
 0x792   :  { %v897_v9 = vmul.f32 %v2075_v57, %v883_v2 }
 0x793   :  { %1298 = vrot.lane.b32.xlu2 %v2576_v3, %s2165_s21 }
 0x797   :  { %1151 = vrot.lane.b32.xlu1 %v2576_v3, %s2166_s22 }
 0x799   :  { %v885_v8 = vpop.f32.mrf.mxu2 }
 0x79a   :  { %v898_v10 = vmul.f32 %v2077_v6, %v885_v8 }
 0x79c   :  { %v901_v62 = vpack.c.bf16 %v898_v10, %v897_v9 }
 0x79e   :  { %1914 = vmatmul.msk.bf16.vlgmr.msrb.gmra.mxu3 %vm462_vm14, %v901_v62 }
 0x79f   :  { %v993_v12 = vpop.xlane.xlu0 %992  ;;  %1300 = vrot.lane.b32.xlu1 %v2585_v19, %s2165_s21 }
 0x7a0   :  { %v999_v13 = vsub.f32 %v2654_v28, %v993_v12 }
 0x7a2   :  { %v1005_v48 = vmul.f32 1.442695, %v999_v13 }
 0x7a4   :  { %2078 = vpow2.f32 %v1005_v48 }
 0x7aa   :  { %v2079_v14 = vpop.eup %2078 }
 0x7ab   :  { %v1015_v17 = vsel %vm502_vm1, %v2079_v14, 0.0  ;;  %v1022_v21 = vpack.c.bf16 %v2073_v35, %v2079_v14 }
 0x7ac   :  { %1016 = vadd.xlane.f32.xlu0 %v1015_v17 }
 0x7ad   :  { %1923 = vmatmul.msk.bf16.gmra.mxu1 %vm502_vm1, %v1022_v21 }
 0x7b2   :  { %v1305_v23 = vpop.permute.xlu0 %1304 }
 0x7b3   :  { %v1316_v27 = vsel %vm462_vm14, %v1305_v23, 0 }
 0x7b4   :  { %1324 = vmatpush.bf16.xpose.msra.mxu2 %v1316_v27 }
 0x7c0   :  { %1302 = vrot.lane.b32.xlu0 %v2576_v3, %s2167_s2 }
 0x7d6   :  { %v856_v18 = vpop.xlane.xlu1 %855 }
 0x7d7   :  { %2080 = vrcp.f32 %v856_v18 }
 0x7dd   :  { %v2081_v52 = vpop.eup %2080 }
 0x7de   :  { %v859_v26 = vpop.xlane.xlu2 %858 }
 0x7df   :  { %2082 = vrcp.f32 %v859_v26 }
 0x7e1   :  { %v1014_v5 = vpop.xlane.xlu0 %1013 }
 0x7e2   :  { %2084 = vrcp.f32 %v1014_v5 }
 0x7e5   :  { %v2083_v34 = vpop.eup %2082 }
 0x7e6   :  { %v1011_v40 = vpop.xlane.xlu2 %1010 }
 0x7e7   :  { %2086 = vrcp.f32 %v1011_v40 }
 0x7e8   :  { %v2085_v0 = vpop.eup %2084 }
 0x7ed   :  { %v2087_v15 = vpop.eup %2086 }
 0x7ee   :  { %v1154_v28 = vpop.permute.xlu2 %1153 }
 0x7ef   :  { %v1165_v29 = vsel %vm462_vm14, %v1154_v28, 0  ;;  %v888_v7 = vpop.f32.mrf.mxu2 }
 0x7f0   :  { %1173 = vmatpush.bf16.xpose.msra.mxu3 %v1165_v29  ;;  %v899_v38 = vmul.f32 %v2081_v52, %v888_v7 }
 0x7f1   :  { %v1020_v30 = vpop.xlane.xlu1 %1019 }
 0x7f2   :  { %2088 = vrcp.f32 %v1020_v30 }
 0x7f5   :  { %v1044_v61 = vpop.f32.mrf.mxu1 }
 0x7f6   :  { %v1058_v16 = vmul.f32 %v2087_v15, %v1044_v61 }
 0x7f7   :  { %v890_v25 = vpop.f32.mrf.mxu2 }
 0x7f8   :  { %v900_v4 = vmul.f32 %v2083_v34, %v890_v25  ;;  %v2089_v56 = vpop.eup %2088 }
 0x7fa   :  { %v902_v41 = vpack.c.bf16 %v900_v4, %v899_v38 }
 0x7fc   :  { %1915 = vmatmul.msk.bf16.gmra.mxu3 %vm462_vm14, %v902_v41 }
 0x7fd   :  { %v1046_v46 = vpop.f32.mrf.mxu1 }
 0x7fe   :  { %v1059_v47 = vmul.f32 %v2085_v0, %v1046_v46 }
 0x800   :  { %v1062_v11 = vpack.c.bf16 %v1059_v47, %v1058_v16 }
 0x802   :  { %1928 = vmatmul.msk.bf16.vlgmr.msrb.gmra.mxu2 %vm462_vm14, %v1062_v11 }
 0x809   :  { %v1152_v50 = vpop.permute.xlu1 %1151 }
 0x80a   :  { %v1162_v33 = vsel %vm462_vm14, %v1152_v50, 0 }
 0x80b   :  { %1174 = vmatpush.bf16.xpose.msra.mxu3 %v1162_v33 }
 0x811   :  { %v1301_v57 = vpop.permute.xlu1 %1300 }
 0x812   :  { %1930 = vmatmul.msk.bf16.vlgmr.msra.gmra.mxu3 %vm462_vm14, %v2576_v3 }
 0x81f   :  { %v1017_v53 = vpop.xlane.xlu0 %1016 }
 0x820   :  { %2090 = vrcp.f32 %v1017_v53 }
 0x821   :  { %v924_v32 = vpop.f32.mrf.mxu3 }
 0x822   :  { %v934_v51 = vadd.f32 %v924_v32, %v2613_v36  ;;  %1931 = vmatmul.msk.bf16.gmra.mxu3 %vm462_vm14, %v2585_v19  ;;  %v1299_v36 = vpop.permute.xlu2 %1298 }
 0x826   :  { %v2091_v58 = vpop.eup %2090 }
 0x829   :  { %v926_v6 = vpop.f32.mrf.mxu3 }
 0x82a   :  { %v1049_v54 = vpop.f32.mrf.mxu1  ;;  %v935_v48 = vadd.f32 %v926_v6, %v2619_v39 }
 0x82b   :  { %v1060_v63 = vmul.f32 %v2091_v58, %v1049_v54 }
 0x832   :  { %v1303_v59 = vpop.permute.xlu0 %1302  ;;  %v1051_v35 = vpop.f32.mrf.mxu1 }
 0x833   :  { %v1313_v22 = vsel %vm462_vm14, %v1303_v59, 0  ;;  %v1061_v1 = vmul.f32 %v2089_v56, %v1051_v35 }
 0x834   :  { %1325 = vmatpush.bf16.xpose.msra.mxu2 %v1313_v22 }
 0x835   :  { %v1063_v2 = vpack.c.bf16 %v1061_v1, %v1060_v63 }
 0x837   :  { %1929 = vmatmul.msk.bf16.gmra.mxu2 %vm462_vm14, %v1063_v2 }
 0x847   :  { %1940 = vmatmul.msk.bf16.vlgmr.msra.gmra.mxu2 %vm462_vm14, %v1299_v36 }
 0x857   :  { %1941 = vmatmul.msk.bf16.gmra.mxu2 %vm462_vm14, %v1301_v57 }
 0x87f   :  { %v929_v8 = vpop.f32.mrf.mxu3 }
 0x880   :  { %v936_v9 = vadd.f32 %v929_v8, %v2623_v42 }
 0x885   :  { %v1085_v10 = vpop.f32.mrf.mxu2 }
 0x886   :  { %v2710_v62 = vadd.f32 %v1085_v10, %v934_v51 }
 0x887   :  { %v931_v12 = vpop.f32.mrf.mxu3 }
 0x888   :  { %v937_v13 = vadd.f32 %v931_v12, %v2627_v43 }
 0x88d   :  { %v1087_v14 = vpop.f32.mrf.mxu2 }
 0x88e   :  { %v2714_v17 = vadd.f32 %v1087_v14, %v935_v48 }
 0x895   :  { %v1176_v21 = vpop.f32.mrf.mxu3 }
 0x896   :  { %v1932_v23 = vadd.f32 -1e+09, %v1176_v21 }
 0x898   :  { %v1190_v27 = vsel %vm2378_vm15, %v1176_v21, %v1932_v23 }
 0x899   :  { %v1194_v26 = vsel %vm502_vm1, %v1190_v27, -inf }
 0x89a   :  { %1195 = vmax.xlane.f32.xlu0 %v1194_v26 }
 0x89d   :  { %v1178_v42 = vpop.f32.mrf.mxu3 }
 0x89e   :  { %v1933_v40 = vadd.f32 -1e+09, %v1178_v42 }
 0x8a0   :  { %v1191_v18 = vsel %vm2385_vm2, %v1178_v42, %v1933_v40 }
 0x8a1   :  { %v1197_v43 = vsel %vm502_vm1, %v1191_v18, -inf }
 0x8a2   :  { %1198 = vmax.xlane.f32.xlu2 %v1197_v43 }
 0x8a5   :  { %v1181_v39 = vpop.f32.mrf.mxu3 }
 0x8a6   :  { %v1934_v28 = vadd.f32 -1e+09, %v1181_v39 }
 0x8a8   :  { %v1192_v29 = vsel %vm2392_vm3, %v1181_v39, %v1934_v28 }
 0x8a9   :  { %v1200_v7 = vsel %vm502_vm1, %v1192_v29, -inf }
 0x8aa   :  { %1201 = vmax.xlane.f32.xlu0 %v1200_v7 }
 0x8ad   :  { %v1183_v46 = vpop.f32.mrf.mxu3 }
 0x8ae   :  { %v1935_v11 = vadd.f32 -1e+09, %v1183_v46 }
 0x8b0   :  { %v1193_v50 = vsel %vm2399_vm4, %v1183_v46, %v1935_v11 }
 0x8b1   :  { %v1203_v33 = vsel %vm502_vm1, %v1193_v50, -inf }
 0x8ba   :  { %v1090_v5 = vpop.f32.mrf.mxu2  ;;  %1387 = vrot.lane.b32.xlu2 %v2587_v20, %s2165_s21 }
 0x8bb   :  { %v2727_v61 = vadd.f32 %v1090_v5, %v936_v9 }
 0x8c2   :  { %v1092_v52 = vpop.f32.mrf.mxu2 }
 0x8c3   :  { %v2729_v34 = vadd.f32 %v1092_v52, %v937_v13 }
 0x8ca   :  { %v1327_v25 = vpop.f32.mrf.mxu2 }
 0x8cb   :  { %v1942_v38 = vadd.f32 -1e+09, %v1327_v25 }
 0x8cd   :  { %v1341_v4 = vsel %vm2378_vm15, %v1327_v25, %v1942_v38 }
 0x8ce   :  { %v1345_v41 = vsel %vm502_vm1, %v1341_v4, -inf }
 0x8cf   :  { %1346 = vmax.xlane.f32.xlu1 %v1345_v41 }
 0x8d2   :  { %v1329_v0 = vpop.f32.mrf.mxu2 }
 0x8d3   :  { %v1943_v15 = vadd.f32 -1e+09, %v1329_v0 }
 0x8d5   :  { %v1342_v16 = vsel %vm2385_vm2, %v1329_v0, %v1943_v15 }
 0x8d6   :  { %v1348_v47 = vsel %vm502_vm1, %v1342_v16, -inf }
 0x8d7   :  { %1349 = vmax.xlane.f32.xlu0 %v1348_v47 }
 0x8da   :  { %v1332_v30 = vpop.f32.mrf.mxu2 }
 0x8db   :  { %v1944_v32 = vadd.f32 -1e+09, %v1332_v30 }
 0x8dd   :  { %v1343_v54 = vsel %vm2392_vm3, %v1332_v30, %v1944_v32 }
 0x8de   :  { %v1351_v58 = vsel %vm502_vm1, %v1343_v54, -inf }
 0x8df   :  { %1204 = vmax.xlane.f32.xlu0 %v1203_v33 }
 0x8e2   :  { %v1334_v51 = vpop.f32.mrf.mxu2 }
 0x8e3   :  { %v1945_v53 = vadd.f32 -1e+09, %v1334_v51 }
 0x8e5   :  { %v2744_v56 = vsel %vm2399_vm4, %v1334_v51, %v1945_v53 }
 0x8e6   :  { %v1354_v59 = vsel %vm502_vm1, %v2744_v56, -inf }
 0x8e7   :  { %1352 = vmax.xlane.f32.xlu0 %v1351_v58  ;;  %1355 = vmax.xlane.f32.xlu2 %v1354_v59 }
 0x8e8   :  { %1385 = vrot.lane.b32.xlu1 %v2592_v24, %s2165_s21 }
 0x8ff   :  { %1459 = vrot.lane.b32.xlu2 %v2576_v3, %s2169_s18 }
 0x90d   :  { %v1196_v35 = vpop.xlane.xlu0 %1195 }
 0x90e   :  { %v1206_v63 = vsub.f32 %v1190_v27, %v1196_v35 }
 0x910   :  { %v1210_v22 = vmul.f32 1.442695, %v1206_v63 }
 0x912   :  { %2092 = vpow2.f32 %v1210_v22 }
 0x915   :  { %v1199_v1 = vpop.xlane.xlu2 %1198 }
 0x916   :  { %v1207_v2 = vsub.f32 %v1191_v18, %v1199_v1 }
 0x918   :  { %v2093_v36 = vpop.eup %2092  ;;  %v1212_v57 = vmul.f32 1.442695, %v1207_v2 }
 0x919   :  { %v1218_v6 = vsel %vm502_vm1, %v2093_v36, 0.0 }
 0x91a   :  { %2094 = vpow2.f32 %v1212_v57  ;;  %1219 = vadd.xlane.f32.xlu1 %v1218_v6 }
 0x91d   :  { %v1202_v8 = vpop.xlane.xlu0 %1201  ;;  %v1388_v9 = vpop.permute.xlu2 %1387 }
 0x91e   :  { %v1208_v10 = vsub.f32 %v1192_v29, %v1202_v8  ;;  %1403 = vmatpush.bf16.msrb.mxu3 %v1388_v9 }
 0x920   :  { %v2095_v12 = vpop.eup %2094  ;;  %v1214_v13 = vmul.f32 1.442695, %v1208_v10 }
 0x921   :  { %v1230_v48 = vpack.c.bf16 %v2095_v12, %v2093_v36  ;;  %v1221_v14 = vsel %vm502_vm1, %v2095_v12, 0.0 }
 0x922   :  { %2096 = vpow2.f32 %v1214_v13  ;;  %1222 = vadd.xlane.f32.xlu0 %v1221_v14 }
 0x923   :  { %1936 = vmatmul.msk.bf16.vlgmr.msrb.gmra.mxu0 %vm502_vm1, %v1230_v48 }
 0x928   :  { %v2097_v21 = vpop.eup %2096 }
 0x929   :  { %v1224_v23 = vsel %vm502_vm1, %v2097_v21, 0.0 }
 0x92a   :  { %1225 = vadd.xlane.f32.xlu0 %v1224_v23 }
 0x933   :  { %1461 = vrot.lane.b32.xlu1 %v2585_v19, %s2169_s18 }
 0x93b   :  { %1455 = vrot.lane.b32.xlu1 %v2576_v3, %s2170_s19 }
 0x942   :  { %v1347_v27 = vpop.xlane.xlu1 %1346 }
 0x943   :  { %1457 = vrot.lane.b32.xlu1 %v2585_v19, %s2170_s19  ;;  %v1357_v40 = vsub.f32 %v1341_v4, %v1347_v27 }
 0x945   :  { %v1361_v43 = vmul.f32 1.442695, %v1357_v40 }
 0x94a   :  { %v1350_v26 = vpop.xlane.xlu0 %1349 }
 0x94b   :  { %v1358_v42 = vsub.f32 %v1342_v16, %v1350_v26 }
 0x94d   :  { %v1363_v18 = vmul.f32 1.442695, %v1358_v42 }
 0x94f   :  { %2098 = vpow2.f32 %v1363_v18 }
 0x950   :  { %2100 = vpow2.f32 %v1361_v43 }
 0x952   :  { %v1205_v39 = vpop.xlane.xlu0 %1204 }
 0x953   :  { %v1209_v28 = vsub.f32 %v1193_v50, %v1205_v39 }
 0x955   :  { %v1216_v29 = vmul.f32 1.442695, %v1209_v28  ;;  %v2099_v7 = vpop.eup %2098 }
 0x956   :  { %v2101_v25 = vpop.eup %2100 }
 0x957   :  { %2102 = vpow2.f32 %v1216_v29  ;;  %v1381_v0 = vpack.c.bf16 %v2099_v7, %v2101_v25 }
 0x95a   :  { %v1386_v5 = vpop.permute.xlu1 %1385  ;;  %v1353_v52 = vpop.xlane.xlu0 %1352 }
 0x95b   :  { %v1359_v38 = vsub.f32 %v1343_v54, %v1353_v52  ;;  %v1356_v41 = vpop.xlane.xlu2 %1355  ;;  %1404 = vmatpush.bf16.msrb.mxu3 %v1386_v5 }
 0x95c   :  { %v1360_v15 = vsub.f32 %v2744_v56, %v1356_v41  ;;  %v1372_v56 = vsel %vm502_vm1, %v2099_v7, 0.0 }
 0x95d   :  { %v2103_v4 = vpop.eup %2102  ;;  %v1365_v46 = vmul.f32 1.442695, %v1359_v38 }
 0x95e   :  { %1946 = vmatmul.msk.bf16.vlgmr.msrb.gmra.mxu3 %vm502_vm1, %v1381_v0  ;;  %v1227_v16 = vsel %vm502_vm1, %v2103_v4, 0.0  ;;  %v1231_v47 = vpack.c.bf16 %v2103_v4, %v2097_v21  ;;  %v1367_v11 = vmul.f32 1.442695, %v1360_v15 }
 0x95f   :  { %1594 = vmatpush.bf16.msra.mxu3 %v2671_v60  ;;  %2104 = vpow2.f32 %v1365_v46  ;;  %1228 = vadd.xlane.f32.xlu0 %v1227_v16  ;;  %v1369_v60 = vsel %vm502_vm1, %v2101_v25, 0.0 }
 0x960   :  { %1937 = vmatmul.msk.bf16.gmra.mxu0 %vm502_vm1, %v1231_v47  ;;  %2106 = vpow2.f32 %v1367_v11 }
 0x963   :  { %v1460_v2 = vpop.permute.xlu2 %1459 }
 0x964   :  { %v1470_v6 = vsel %vm462_vm14, %v1460_v2, 0 }
 0x965   :  { %v2105_v30 = vpop.eup %2104 }
 0x966   :  { %v1375_v50 = vsel %vm502_vm1, %v2105_v30, 0.0  ;;  %v2107_v33 = vpop.eup %2106 }
 0x967   :  { %1376 = vadd.xlane.f32.xlu2 %v1375_v50  ;;  %v1382_v32 = vpack.c.bf16 %v2107_v33, %v2105_v30  ;;  %v1378_v57 = vsel %vm502_vm1, %v2107_v33, 0.0 }
 0x96e   :  { %1947 = vmatmul.msk.bf16.gmra.mxu3 %vm502_vm1, %v1382_v32 }
 0x973   :  { %1616 = vrot.lane.b32.xlu0 %v2585_v19, %s2168_s1 }
 0x97f   :  { %1614 = vrot.lane.b32.xlu2 %v2576_v3, %s2168_s1 }
 0x987   :  { %1612 = vrot.lane.b32.xlu2 %v2585_v19, %s2171_s20 }
 0x98d   :  { %v1220_v51 = vpop.xlane.xlu1 %1219 }
 0x98e   :  { %2108 = vrcp.f32 %v1220_v51 }
 0x98f   :  { %1542 = vrot.lane.b32.xlu2 %v2587_v20, %s2170_s19 }
 0x994   :  { %v2109_v35 = vpop.eup %2108 }
 0x995   :  { %v1223_v53 = vpop.xlane.xlu0 %1222 }
 0x996   :  { %2110 = vrcp.f32 %v1223_v53 }
 0x99c   :  { %v2111_v19 = vpop.eup %2110 }
 0x99d   :  { %1370 = vadd.xlane.f32.xlu0 %v1369_v60  ;;  %v1226_v8 = vpop.xlane.xlu0 %1225 }
 0x99e   :  { %2112 = vrcp.f32 %v1226_v8 }
 0x9a0   :  { %v1249_v54 = vpop.f32.mrf.mxu0 }
 0x9a1   :  { %v1263_v22 = vmul.f32 %v2109_v35, %v1249_v54 }
 0x9a4   :  { %v2113_v48 = vpop.eup %2112 }
 0x9a5   :  { %v1462_v58 = vpop.permute.xlu1 %1461  ;;  %1373 = vadd.xlane.f32.xlu0 %v1372_v56 }
 0x9a6   :  { %v1473_v59 = vsel %vm462_vm14, %v1462_v58, 0 }
 0x9a7   :  { %1481 = vmatpush.bf16.xpose.msra.mxu1 %v1473_v59 }
 0x9a8   :  { %v1251_v63 = vpop.f32.mrf.mxu0 }
 0x9a9   :  { %v1264_v1 = vmul.f32 %v2111_v19, %v1251_v63 }
 0x9ab   :  { %v1267_v36 = vpack.c.bf16 %v1264_v1, %v1263_v22 }
 0x9ad   :  { %1938 = vmatmul.msk.bf16.vlgmr.msrb.gmra.mxu1 %vm462_vm14, %v1267_v36  ;;  %1379 = vadd.xlane.f32.xlu0 %v1378_v57  ;;  %v1456_v39 = vpop.permute.xlu1 %1455 }
 0x9af   :  { %1482 = vmatpush.bf16.xpose.msra.mxu1 %v1470_v6 }
 0x9b5   :  { %v1458_v28 = vpop.permute.xlu1 %1457 }
 0x9c1   :  { %1610 = vrot.lane.b32.xlu0 %v2576_v3, %s2171_s20 }
 0x9d2   :  { %v1229_v10 = vpop.xlane.xlu0 %1228 }
 0x9d3   :  { %2114 = vrcp.f32 %v1229_v10 }
 0x9d9   :  { %v2115_v14 = vpop.eup %2114 }
 0x9da   :  { %v1377_v9 = vpop.xlane.xlu2 %1376 }
 0x9dd   :  { %v1254_v12 = vpop.f32.mrf.mxu0 }
 0x9de   :  { %v1265_v27 = vmul.f32 %v2113_v48, %v1254_v12 }
 0x9e1   :  { %v1406_v29 = vpop.f32.mrf.mxu3 }
 0x9e2   :  { %v1615_v13 = vpop.permute.xlu2 %1614 }
 0x9e3   :  { %v1625_v18 = vsel %vm462_vm14, %v1615_v13, 0 }
 0x9e5   :  { %v1256_v21 = vpop.f32.mrf.mxu0  ;;  %v1617_v23 = vpop.permute.xlu0 %1616 }
 0x9e6   :  { %v1266_v26 = vmul.f32 %v2115_v14, %v1256_v21  ;;  %v1628_v42 = vsel %vm462_vm14, %v1617_v23, 0 }
 0x9e7   :  { %1636 = vmatpush.bf16.xpose.msrb.mxu0 %v1628_v42 }
 0x9e8   :  { %v1268_v40 = vpack.c.bf16 %v1266_v26, %v1265_v27 }
 0x9e9   :  { %v1408_v52 = vpop.f32.mrf.mxu3 }
 0x9ea   :  { %1939 = vmatmul.msk.bf16.gmra.mxu1 %vm462_vm14, %v1268_v40  ;;  %v1613_v3 = vpop.permute.xlu2 %1612 }
 0x9ef   :  { %1637 = vmatpush.bf16.xpose.msrb.mxu0 %v1625_v18 }
 0x9f1   :  { %v1411_v46 = vpop.f32.mrf.mxu3 }
 0x9f2   :  { %v1543_v43 = vpop.permute.xlu2 %1542 }
 0x9f3   :  { %1558 = vmatpush.bf16.msrb.mxu2 %v1543_v43 }
 0x9f9   :  { %v1413_v47 = vpop.f32.mrf.mxu3 }
 0x9fa   :  { %1950 = vmatmul.msk.bf16.vlgmr.msra.gmra.mxu1 %vm462_vm14, %v1456_v39 }
 0xa0a   :  { %1951 = vmatmul.msk.bf16.gmra.mxu1 %vm462_vm14, %v1458_v28 }
 0xa10   :  { %v1371_v7 = vpop.xlane.xlu0 %1370 }
 0xa11   :  { %2116 = vrcp.f32 %v1371_v7 }
 0xa17   :  { %v2117_v25 = vpop.eup %2116 }
 0xa18   :  { %v1374_v5 = vpop.xlane.xlu0 %1373  ;;  %v1420_v41 = vmul.f32 %v2117_v25, %v1406_v29 }
 0xa19   :  { %2118 = vrcp.f32 %v1374_v5 }
 0xa1f   :  { %v2119_v38 = vpop.eup %2118 }
 0xa20   :  { %v1421_v0 = vmul.f32 %v2119_v38, %v1408_v52  ;;  %v1380_v4 = vpop.xlane.xlu0 %1379 }
 0xa21   :  { %2120 = vrcp.f32 %v1380_v4 }
 0xa22   :  { %v1424_v15 = vpack.c.bf16 %v1421_v0, %v1420_v41  ;;  %2122 = vrcp.f32 %v1377_v9 }
 0xa24   :  { %1948 = vmatmul.msk.bf16.vlgmr.msra.gmra.mxu0 %vm462_vm14, %v1424_v15 }
 0xa27   :  { %v2121_v16 = vpop.eup %2120 }
 0xa28   :  { %v1423_v11 = vmul.f32 %v2121_v16, %v1413_v47  ;;  %v2123_v30 = vpop.eup %2122 }
 0xa29   :  { %v1422_v50 = vmul.f32 %v2123_v30, %v1411_v46 }
 0xa2a   :  { %v1284_v60 = vpop.f32.mrf.mxu1 }
 0xa2b   :  { %v1425_v33 = vpack.c.bf16 %v1423_v11, %v1422_v50  ;;  %v1294_v8 = vadd.f32 %v2605_v31, %v1284_v60 }
 0xa32   :  { %v1286_v51 = vpop.f32.mrf.mxu1 }
 0xa33   :  { %v1611_v32 = vpop.permute.xlu0 %1610  ;;  %v1295_v12 = vadd.f32 %v2605_v31, %v1286_v51 }
 0xa34   :  { %1949 = vmatmul.msk.bf16.gmra.mxu0 %vm462_vm14, %v1425_v33 }
 0xa44   :  { %1960 = vmatmul.msk.bf16.vlgmr.msrb.gmra.mxu0 %vm462_vm14, %v1611_v32 }
 0xa54   :  { %1961 = vmatmul.msk.bf16.gmra.mxu0 %vm462_vm14, %v1613_v3 }
 0xa67   :  { %v1289_v53 = vpop.f32.mrf.mxu1 }
 0xa68   :  { %v1296_v14 = vadd.f32 %v2605_v31, %v1289_v53 }
 0xa6f   :  { %v1291_v54 = vpop.f32.mrf.mxu1 }
 0xa77   :  { %v1484_v56 = vpop.f32.mrf.mxu1 }
 0xa78   :  { %v1952_v58 = vadd.f32 -1e+09, %v1484_v56 }
 0xa7a   :  { %v1498_v59 = vsel %vm2378_vm15, %v1484_v56, %v1952_v58 }
 0xa7b   :  { %v1502_v35 = vsel %vm502_vm1, %v1498_v59, -inf }
 0xa7c   :  { %1503 = vmax.xlane.f32.xlu0 %v1502_v35 }
 0xa7f   :  { %v1486_v19 = vpop.f32.mrf.mxu1 }
 0xa80   :  { %v1953_v63 = vadd.f32 -1e+09, %v1486_v19 }
 0xa82   :  { %v1499_v22 = vsel %vm2385_vm2, %v1486_v19, %v1953_v63 }
 0xa83   :  { %v1505_v1 = vsel %vm502_vm1, %v1499_v22, -inf }
 0xa84   :  { %1506 = vmax.xlane.f32.xlu1 %v1505_v1 }
 0xa87   :  { %v1489_v2 = vpop.f32.mrf.mxu1 }
 0xa88   :  { %v1954_v36 = vadd.f32 -1e+09, %v1489_v2 }
 0xa8a   :  { %v1500_v57 = vsel %vm2392_vm3, %v1489_v2, %v1954_v36 }
 0xa8b   :  { %v1508_v6 = vsel %vm502_vm1, %v1500_v57, -inf }
 0xa8c   :  { %1509 = vmax.xlane.f32.xlu2 %v1508_v6 }
 0xa8f   :  { %v1491_v3 = vpop.f32.mrf.mxu1 }
 0xa90   :  { %1697 = vrot.lane.b32.xlu0 %v2587_v20, %s2171_s20  ;;  %v1297_v20 = vadd.f32 %v2605_v31, %v1291_v54  ;;  %v1955_v39 = vadd.f32 -1e+09, %v1491_v3 }
 0xa92   :  { %v1501_v7 = vsel %vm2399_vm4, %v1491_v3, %v1955_v39 }
 0xa93   :  { %v1511_v5 = vsel %vm502_vm1, %v1501_v7, -inf }
 0xa9d   :  { %1540 = vrot.lane.b32.xlu1 %v2592_v24, %s2170_s19 }
 0xaa1   :  { %v1441_v9 = vpop.f32.mrf.mxu0 }
 0xaa2   :  { %v2809_v10 = vadd.f32 %v1441_v9, %v1294_v8 }
 0xaa9   :  { %v1443_v13 = vpop.f32.mrf.mxu0 }
 0xaaa   :  { %v2812_v48 = vadd.f32 %v1443_v13, %v1295_v12 }
 0xab1   :  { %v1446_v21 = vpop.f32.mrf.mxu0 }
 0xab2   :  { %v2815_v23 = vadd.f32 %v1446_v21, %v1296_v14 }
 0xab9   :  { %v1448_v27 = vpop.f32.mrf.mxu0 }
 0xaba   :  { %v2818_v26 = vadd.f32 %v1448_v27, %v1297_v20 }
 0xac1   :  { %v1639_v42 = vpop.f32.mrf.mxu0 }
 0xac2   :  { %v1962_v40 = vadd.f32 -1e+09, %v1639_v42 }
 0xac4   :  { %v1653_v18 = vsel %vm2378_vm15, %v1639_v42, %v1962_v40 }
 0xac5   :  { %v1657_v43 = vsel %vm502_vm1, %v1653_v18, -inf }
 0xac6   :  { %1658 = vmax.xlane.f32.xlu2 %v1657_v43 }
 0xac9   :  { %v1641_v28 = vpop.f32.mrf.mxu0 }
 0xaca   :  { %v1963_v29 = vadd.f32 -1e+09, %v1641_v28 }
 0xacc   :  { %v1654_v31 = vsel %vm2385_vm2, %v1641_v28, %v1963_v29 }
 0xacd   :  { %v1660_v52 = vsel %vm502_vm1, %v1654_v31, -inf }
 0xace   :  { %1512 = vmax.xlane.f32.xlu2 %v1511_v5  ;;  %1661 = vmax.xlane.f32.xlu0 %v1660_v52 }
 0xad1   :  { %v1644_v37 = vpop.f32.mrf.mxu0 }
 0xad2   :  { %v1964_v25 = vadd.f32 -1e+09, %v1644_v37 }
 0xad4   :  { %v1655_v38 = vsel %vm2392_vm3, %v1644_v37, %v1964_v25 }
 0xad5   :  { %v1663_v41 = vsel %vm502_vm1, %v1655_v38, -inf }
 0xad6   :  { %1664 = vmax.xlane.f32.xlu2 %v1663_v41 }
 0xad9   :  { %v1646_v0 = vpop.f32.mrf.mxu0 }
 0xada   :  { %v1965_v15 = vadd.f32 -1e+09, %v1646_v0 }
 0xadc   :  { %v2834_v44 = vsel %vm2399_vm4, %v1646_v0, %v1965_v15 }
 0xadd   :  { %v1666_v4 = vsel %vm502_vm1, %v2834_v44, -inf }
 0xade   :  { %1667 = vmax.xlane.f32.xlu1 %v1666_v4 }
 0xae2   :  { %1695 = vrot.lane.b32.xlu0 %v2592_v24, %s2171_s20 }
 0xaef   :  { %v1504_v46 = vpop.xlane.xlu0 %1503 }
 0xaf0   :  { %v1514_v47 = vsub.f32 %v1498_v59, %v1504_v46 }
 0xaf2   :  { %v1518_v30 = vmul.f32 1.442695, %v1514_v47 }
 0xaf7   :  { %v1507_v16 = vpop.xlane.xlu1 %1506 }
 0xaf8   :  { %v1515_v49 = vsub.f32 %v1499_v22, %v1507_v16 }
 0xafa   :  { %v1520_v11 = vmul.f32 1.442695, %v1515_v49 }
 0xafc   :  { %2124 = vpow2.f32 %v1520_v11 }
 0xafd   :  { %2126 = vpow2.f32 %v1518_v30 }
 0xaff   :  { %v1510_v50 = vpop.xlane.xlu2 %1509 }
 0xb00   :  { %v1516_v33 = vsub.f32 %v1500_v57, %v1510_v50 }
 0xb02   :  { %v2125_v32 = vpop.eup %2124  ;;  %v1522_v55 = vmul.f32 1.442695, %v1516_v33  ;;  %v1698_v60 = vpop.permute.xlu0 %1697 }
 0xb03   :  { %1713 = vmatpush.bf16.msrb.mxu1 %v1698_v60  ;;  %v1529_v51 = vsel %vm502_vm1, %v2125_v32, 0.0  ;;  %v2127_v53 = vpop.eup %2126 }
 0xb04   :  { %2128 = vpow2.f32 %v1522_v55  ;;  %1530 = vadd.xlane.f32.xlu2 %v1529_v51  ;;  %v1526_v54 = vsel %vm502_vm1, %v2127_v53, 0.0  ;;  %v1538_v59 = vpack.c.bf16 %v2125_v32, %v2127_v53 }
 0xb0a   :  { %v2129_v24 = vpop.eup %2128 }
 0xb0b   :  { %v1532_v56 = vsel %vm502_vm1, %v2129_v24, 0.0 }
 0xb0c   :  { %1527 = vadd.xlane.f32.xlu0 %v1526_v54  ;;  %1533 = vadd.xlane.f32.xlu2 %v1532_v56 }
 0xb0f   :  { %v1541_v58 = vpop.permute.xlu1 %1540 }
 0xb10   :  { %1559 = vmatpush.bf16.msrb.mxu2 %v1541_v58 }
 0xb13   :  { %1956 = vmatmul.msk.bf16.vlgmr.msrb.gmra.mxu2 %vm502_vm1, %v1538_v59 }
 0xb14   :  { %1749 = vmatpush.bf16.msra.mxu2 %v2680_v45 }
 0xb35   :  { %1099 = vxpose.xlu0.b32.start [1/4] (short) (narrow) %v2710_v62, 64 }
 0xb39   :  { %v1659_v35 = vpop.xlane.xlu2 %1658 }
 0xb3a   :  { %v1669_v19 = vsub.f32 %v1653_v18, %v1659_v35 }
 0xb3c   :  { %v1673_v63 = vmul.f32 1.442695, %v1669_v19 }
 0xb3d   :  { %1100 = vxpose.xlu0.b32.cont [2/4] (short) (narrow) %v2714_v17, 64 }
 0xb3e   :  { %2130 = vpow2.f32 %v1673_v63 }
 0xb41   :  { %v1662_v22 = vpop.xlane.xlu0 %1661  ;;  %v1513_v1 = vpop.xlane.xlu2 %1512 }
 0xb42   :  { %v1670_v2 = vsub.f32 %v1654_v31, %v1662_v22  ;;  %v1517_v36 = vsub.f32 %v1501_v7, %v1513_v1 }
 0xb44   :  { %v2131_v57 = vpop.eup %2130  ;;  %v1675_v6 = vmul.f32 1.442695, %v1670_v2  ;;  %v1524_v8 = vmul.f32 1.442695, %v1517_v36 }
 0xb45   :  { %1101 = vxpose.xlu0.b32.cont [3/4] (short) (narrow) %v2727_v61, 64  ;;  %v1681_v45 = vsel %vm502_vm1, %v2131_v57, 0.0 }
 0xb46   :  { %2132 = vpow2.f32 %v1675_v6  ;;  %1682 = vadd.xlane.f32.xlu2 %v1681_v45 }
 0xb47   :  { %2134 = vpow2.f32 %v1524_v8 }
 0xb49   :  { %v1665_v62 = vpop.xlane.xlu2 %1664 }
 0xb4a   :  { %v1671_v9 = vsub.f32 %v1655_v38, %v1665_v62 }
 0xb4c   :  { %v2133_v12 = vpop.eup %2132  ;;  %v1677_v13 = vmul.f32 1.442695, %v1671_v9 }
 0xb4d   :  { %v2135_v17 = vpop.eup %2134  ;;  %1102 = vxpose.xlu0.b32.end [4/4] (short) (narrow) %v2729_v34, 64  ;;  %v1684_v14 = vsel %vm502_vm1, %v2133_v12, 0.0  ;;  %v1693_v43 = vpack.c.bf16 %v2133_v12, %v2131_v57  ;;  %v2156_v57 = vld [vmem:[%s2978_s0] sm:$0xff] }
 0xb4e   :  { %2136 = vpow2.f32 %v1677_v13  ;;  %1685 = vadd.xlane.f32.xlu2 %v1684_v14  ;;  %v1539_v21 = vpack.c.bf16 %v2135_v17, %v2129_v24  ;;  %v1535_v3 = vsel %vm502_vm1, %v2135_v17, 0.0 }
 0xb50   :  { %1957 = vmatmul.msk.bf16.gmra.mxu2 %vm502_vm1, %v1539_v21 }
 0xb51   :  { %v1668_v61 = vpop.xlane.xlu1 %1667 }
 0xb52   :  { %v1672_v20 = vsub.f32 %v2834_v44, %v1668_v61 }
 0xb54   :  { %v2137_v27 = vpop.eup %2136  ;;  %v1679_v42 = vmul.f32 1.442695, %v1672_v20  ;;  %v1696_v40 = vpop.permute.xlu0 %1695 }
 0xb55   :  { %1714 = vmatpush.bf16.msrb.mxu1 %v1696_v40  ;;  %v1687_v18 = vsel %vm502_vm1, %v2137_v27, 0.0 }
 0xb56   :  { %2138 = vpow2.f32 %v1679_v42  ;;  %1536 = vadd.xlane.f32.xlu2 %v1535_v3  ;;  %1688 = vadd.xlane.f32.xlu1 %v1687_v18 }
 0xb58   :  { %1966 = vmatmul.msk.bf16.vlgmr.msrb.gmra.mxu1 %vm502_vm1, %v1693_v43  ;;  %v2158_v43 = vld [vmem:[%s2978_s0 + $0x10] sm:$0xff] }
 0xb5c   :  { %v2139_v34 = vpop.eup %2138 }
 0xb5d   :  { %v1690_v39 = vsel %vm502_vm1, %v2139_v34, 0.0  ;;  %v1694_v28 = vpack.c.bf16 %v2139_v34, %v2137_v27 }
 0xb5e   :  { %1691 = vadd.xlane.f32.xlu2 %v1690_v39  ;;  %v2159_v39 = vld [vmem:[%s2978_s0 + $0x18] sm:$0xff] }
 0xb68   :  { %1967 = vmatmul.msk.bf16.gmra.mxu1 %vm502_vm1, %v1694_v28 }
 0xb77   :  { %v1531_v29 = vpop.xlane.xlu2 %1530 }
 0xb78   :  { %2140 = vrcp.f32 %v1531_v29 }
 0xb7e   :  { %v2141_v5 = vpop.eup %2140 }
 0xb7f   :  { %v1528_v7 = vpop.xlane.xlu0 %1527  ;;  %v1534_v0 = vpop.xlane.xlu2 %1533 }
 0xb80   :  { %2142 = vrcp.f32 %v1528_v7  ;;  %v2160_v7 = vld [vmem:[%s2978_s0 + $0x20] sm:$0xff] }
 0xb81   :  { %2144 = vrcp.f32 %v1534_v0  ;;  %v1971_v0 = vld [vmem:[%s2978_s0 + $0x48] sm:$0xff] }
 0xb86   :  { %v2143_v52 = vpop.eup %2142 }
 0xb87   :  { %v2145_v49 = vpop.eup %2144 }
 0xb96   :  { %v1561_v31 = vpop.f32.mrf.mxu2 }
 0xb97   :  { %v1575_v25 = vmul.f32 %v2143_v52, %v1561_v31 }
 0xb9e   :  { %v1563_v37 = vpop.f32.mrf.mxu2 }
 0xb9f   :  { %v1576_v38 = vmul.f32 %v2141_v5, %v1563_v37  ;;  %v1970_v5 = vld [vmem:[%s2978_s0 + $0x40] sm:$0xff] }
 0xba1   :  { %v1579_v41 = vpack.c.bf16 %v1576_v38, %v1575_v25  ;;  %v2161_v38 = vld [vmem:[%s2978_s0 + $0x28] sm:$0xff] }
 0xba3   :  { %1958 = vmatmul.msk.bf16.vlgmr.msra.gmra.mxu3 %vm462_vm14, %v1579_v41 }
 0xbb9   :  { %v1683_v15 = vpop.xlane.xlu2 %1682 }
 0xbc1   :  { %v1686_v44 = vpop.xlane.xlu2 %1685 }
 0xbc9   :  { %v1537_v4 = vpop.xlane.xlu2 %1536  ;;  %v1689_v54 = vpop.xlane.xlu1 %1688 }
 0xbca   :  { %2146 = vrcp.f32 %v1537_v4 }
 0xbcb   :  { %2148 = vrcp.f32 %v1683_v15 }
 0xbcc   :  { %2150 = vrcp.f32 %v1686_v44 }
 0xbcd   :  { %2152 = vrcp.f32 %v1689_v54  ;;  %v1975_v54 = vld [vmem:[%s2978_s0 + $0x68] sm:$0xff] }
 0xbd0   :  { %v2147_v47 = vpop.eup %2146 }
 0xbd1   :  { %v2149_v30 = vpop.eup %2148  ;;  %v1692_v56 = vpop.xlane.xlu2 %1691 }
 0xbd2   :  { %v2151_v32 = vpop.eup %2150  ;;  %2154 = vrcp.f32 %v1692_v56 }
 0xbd3   :  { %v1566_v46 = vpop.f32.mrf.mxu2  ;;  %v2153_v59 = vpop.eup %2152 }
 0xbd4   :  { %v1577_v50 = vmul.f32 %v2145_v49, %v1566_v46  ;;  %v2162_v46 = vld [vmem:[%s2978_s0 + $0x30] sm:$0xff] }
 0xbd5   :  { %v1716_v16 = vpop.f32.mrf.mxu1  ;;  %v1972_v49 = vld [vmem:[%s2978_s0 + $0x50] sm:$0xff] }
 0xbd6   :  { %v1730_v60 = vmul.f32 %v2149_v30, %v1716_v16 }
 0xbd8   :  { %v2155_v35 = vpop.eup %2154 }
 0xbd9   :  { %v1115_v36 = vpop.trf.xlu0 }
 0xbda   :  { %v1131_v6 = vadd.f32 %v2156_v57, %v1115_v36 }
 0xbdb   :  { %v1568_v11 = vpop.f32.mrf.mxu2 }
 0xbdc   :  { %v1578_v33 = vmul.f32 %v2147_v47, %v1568_v11  ;;  %1139 = vst.msk [vmem:[%s2983_s5] sm:$0xff] %vm502_vm1, %v1131_v6 }
 0xbdd   :  { %v1718_v55 = vpop.f32.mrf.mxu1 }
 0xbde   :  { %v1580_v51 = vpack.c.bf16 %v1578_v33, %v1577_v50  ;;  %v1731_v53 = vmul.f32 %v2151_v32, %v1718_v55  ;;  %v2163_v50 = vld [vmem:[%s2978_s0 + $0x38] sm:$0xff] }
 0xbdf   :  { %v1973_v32 = vld [vmem:[%s2978_s0 + $0x58] sm:$0xff] }
 0xbe0   :  { %v1734_v24 = vpack.c.bf16 %v1731_v53, %v1730_v60  ;;  %1959 = vmatmul.msk.bf16.gmra.mxu3 %vm462_vm14, %v1580_v51  ;;  %v1974_v51 = vld [vmem:[%s2978_s0 + $0x60] sm:$0xff] }
 0xbe1   :  { %v1116_v3 = vpop.trf.xlu0 }
 0xbe2   :  { %1968 = vmatmul.msk.bf16.vlgmr.msra.gmra.mxu2 %vm462_vm14, %v1734_v24 }
 0xbe5   :  { %v1721_v58 = vpop.f32.mrf.mxu1 }
 0xbe6   :  { %v1732_v63 = vmul.f32 %v2153_v59, %v1721_v58  ;;  %v1976_v59 = vld [vmem:[%s2978_s0 + $0x70] sm:$0xff] }
 0xbed   :  { %v1723_v19 = vpop.f32.mrf.mxu1 }
 0xbee   :  { %v1733_v22 = vmul.f32 %v2155_v35, %v1723_v19 }
 0xbf0   :  { %v1735_v1 = vpack.c.bf16 %v1733_v22, %v1732_v63  ;;  %v1977_v63 = vld [vmem:[%s2978_s0 + $0x78] sm:$0xff] }
 0xbf2   :  { %1969 = vmatmul.msk.bf16.gmra.mxu2 %vm462_vm14, %v1735_v1 }
 0xc26   :  { %v1596_v2 = vpop.f32.mrf.mxu3 }
 0xc27   :  { %v1606_v8 = vadd.f32 %v1596_v2, %v2809_v10 }
 0xc2e   :  { %v1598_v9 = vpop.f32.mrf.mxu3 }
 0xc2f   :  { %v1607_v12 = vadd.f32 %v1598_v9, %v2812_v48  ;;  %v2157_v48 = vld [vmem:[%s2978_s0 + $0x8] sm:$0xff] }
 0xc30   :  { %v1132_v18 = vadd.f32 %v2157_v48, %v1116_v3 }
 0xc32   :  { %1140 = vst.msk [vmem:[%s2983_s5 + $0x8] sm:$0xff] %vm502_vm1, %v1132_v18 }
 0xc63   :  { %v1601_v14 = vpop.f32.mrf.mxu3 }
 0xc64   :  { %v1608_v21 = vadd.f32 %v1601_v14, %v2815_v23  ;;  %v1117_v23 = vpop.trf.xlu0 }
 0xc65   :  { %v1751_v45 = vpop.f32.mrf.mxu2 }
 0xc66   :  { %v1761_v62 = vadd.f32 %v1751_v45, %v1606_v8 }
 0xc68   :  { %1773 = vxpose.xlu1.b32.start [1/4] (short) (narrow) %v1761_v62, 64 }
 0xc6b   :  { %v1603_v27 = vpop.f32.mrf.mxu3 }
 0xc6c   :  { %v1609_v42 = vadd.f32 %v1603_v27, %v2818_v26  ;;  %v1133_v26 = vadd.f32 %v2158_v43, %v1117_v23  ;;  %v1118_v34 = vpop.trf.xlu0 }
 0xc6d   :  { %v1753_v13 = vpop.f32.mrf.mxu2  ;;  %v1134_v28 = vadd.f32 %v2159_v39, %v1118_v34 }
 0xc6e   :  { %v1762_v17 = vadd.f32 %v1753_v13, %v1607_v12  ;;  %1141 = vst.msk [vmem:[%s2983_s5 + $0x10] sm:$0xff] %vm502_vm1, %v1133_v26 }
 0xc6f   :  { %1142 = vst.msk [vmem:[%s2983_s5 + $0x18] sm:$0xff] %vm502_vm1, %v1134_v28 }
 0xc70   :  { %1774 = vxpose.xlu1.b32.cont [2/4] (short) (narrow) %v1762_v17, 64 }
 0xc74   :  { %v1119_v29 = vpop.trf.xlu0 }
 0xc75   :  { %v1756_v61 = vpop.f32.mrf.mxu2  ;;  %v1135_v31 = vadd.f32 %v2160_v7, %v1119_v29 }
 0xc76   :  { %v1763_v20 = vadd.f32 %v1756_v61, %v1608_v21 }
 0xc77   :  { %1143 = vst.msk [vmem:[%s2983_s5 + $0x20] sm:$0xff] %vm502_vm1, %v1135_v31 }
 0xc78   :  { %1775 = vxpose.xlu1.b32.cont [3/4] (short) (narrow) %v1763_v20, 64 }
 0xc7c   :  { %v1120_v25 = vpop.trf.xlu0 }
 0xc7d   :  { %v1758_v40 = vpop.f32.mrf.mxu2  ;;  %v1136_v41 = vadd.f32 %v2161_v38, %v1120_v25 }
 0xc7e   :  { %v1764_v10 = vadd.f32 %v1758_v40, %v1609_v42 }
 0xc7f   :  { %1144 = vst.msk [vmem:[%s2983_s5 + $0x28] sm:$0xff] %vm502_vm1, %v1136_v41 }
 0xc80   :  { %1776 = vxpose.xlu1.b32.end [4/4] (short) (narrow) %v1764_v10, 64 }
 0xc84   :  { %v1121_v4 = vpop.trf.xlu0 }
 0xc85   :  { %v1137_v16 = vadd.f32 %v2162_v46, %v1121_v4 }
 0xc87   :  { %1145 = vst.msk [vmem:[%s2983_s5 + $0x30] sm:$0xff] %vm502_vm1, %v1137_v16 }
 0xc8c   :  { %v1122_v30 = vpop.trf.xlu0 }
 0xc8d   :  { %v1138_v33 = vadd.f32 %v2163_v50, %v1122_v30 }
 0xc8f   :  { %1146 = vst.msk [vmem:[%s2983_s5 + $0x38] sm:$0xff] %vm502_vm1, %v1138_v33 }
 0xd0c   :  { %v1789_v52 = vpop.trf.xlu1 }
 0xd0d   :  { %v1805_v37 = vadd.f32 %v1970_v5, %v1789_v52 }
 0xd0f   :  { %1978 = vst.msk [vmem:[%s2983_s5 + $0x40] sm:$0xff] %vm502_vm1, %v1805_v37 }
 0xd14   :  { %v1790_v15 = vpop.trf.xlu1 }
 0xd15   :  { %v1806_v44 = vadd.f32 %v1971_v0, %v1790_v15 }
 0xd17   :  { %1979 = vst.msk [vmem:[%s2983_s5 + $0x48] sm:$0xff] %vm502_vm1, %v1806_v44 }
 0xd1c   :  { %v1791_v47 = vpop.trf.xlu1 }
 0xd1d   :  { %v1807_v11 = vadd.f32 %v1972_v49, %v1791_v47 }
 0xd1f   :  { %1980 = vst.msk [vmem:[%s2983_s5 + $0x50] sm:$0xff] %vm502_vm1, %v1807_v11 }
 0xd24   :  { %v1792_v55 = vpop.trf.xlu1 }
 0xd25   :  { %v1808_v60 = vadd.f32 %v1973_v32, %v1792_v55 }
 0xd27   :  { %1981 = vst.msk [vmem:[%s2983_s5 + $0x58] sm:$0xff] %vm502_vm1, %v1808_v60 }
 0xd2c   :  { %v1793_v53 = vpop.trf.xlu1 }
 0xd2d   :  { %v1809_v24 = vadd.f32 %v1974_v51, %v1793_v53 }
 0xd2f   :  { %1982 = vst.msk [vmem:[%s2983_s5 + $0x60] sm:$0xff] %vm502_vm1, %v1809_v24 }
 0xd34   :  { %v1794_v56 = vpop.trf.xlu1 }
 0xd35   :  { %v1810_v58 = vadd.f32 %v1975_v54, %v1794_v56 }
 0xd37   :  { %1983 = vst.msk [vmem:[%s2983_s5 + $0x68] sm:$0xff] %vm502_vm1, %v1810_v58 }
 0xd3c   :  { %v1795_v35 = vpop.trf.xlu1 }
 0xd3d   :  { %v1811_v19 = vadd.f32 %v1976_v59, %v1795_v35 }
 0xd3f   :  { %1984 = vst.msk [vmem:[%s2983_s5 + $0x70] sm:$0xff] %vm502_vm1, %v1811_v19 }
 0xd44   :  { %v1796_v22 = vpop.trf.xlu1 }
 0xd45   :  { %v1812_v1 = vadd.f32 %v1977_v63, %v1796_v22 }
 0xd47   :  { %1985 = vst.msk [vmem:[%s2983_s5 + $0x78] sm:$0xff] %vm502_vm1, %v1812_v1 }

</bundles_post_ra>
